<compile_context>
chip_gen: v7x
topology: tpu7x:2x2x1
jax: 0.10.0
libtpu: 0.0.40
codegen_flags: <defaults>
</compile_context>

<pallas_src>
import functools
import math

import jax
import jax.numpy as jnp
from jax import lax
from jax.experimental import pallas as pl
from jax.experimental.pallas import tpu as pltpu


def _round_up(x, m):
    return ((x + m - 1) // m) * m


def _vmem_limit_bytes():
    """Generation-aware scoped-VMEM limit.

    64 MiB on 128-MiB parts (v5e/v6e, above their 16/32 MiB default scoped
    limits), ~48 MiB on v7x (64 MiB physical). Falls back to 64 MiB if the
    hardware query is unavailable.
    """
    cap = 128 * 1024 * 1024
    try:
        info = pltpu.get_tpu_info()
        c = int(getattr(info, "vmem_capacity_bytes", 0) or 0)
        if c >= 16 * 1024 * 1024:
            cap = c
    except Exception:
        pass
    return int(min(64 * 1024 * 1024, (cap * 3) // 4))


# ------------------------------ kernel bodies ------------------------------

def _qkv_kernel(x_ref, w_ref, b_ref, o_ref):
    # Single fused Q|K|V projection: (tm, H) @ (H, 3H) + (1, 3H).
    acc = jnp.dot(x_ref[...], w_ref[...], preferred_element_type=jnp.float32)
    o_ref[...] = (acc + b_ref[...].astype(jnp.float32)).astype(o_ref.dtype)


def _attention_kernel(qkv_ref, mask_ref, o_ref, *, num_heads, head_dim, hidden,
                      scale):
    # qkv_ref: (S, 3H) for one batch; mask_ref: (1, S) or (S, S) additive mask;
    # o_ref: (S, H) context written lane-dense in (B, S, H) layout.
    mask = mask_ref[...].astype(jnp.float32)

    parts = []
    for h in range(num_heads):                     # static unroll over heads
        q = qkv_ref[:, h * head_dim:(h + 1) * head_dim]
        k = qkv_ref[:, hidden + h * head_dim:hidden + (h + 1) * head_dim]
        v = qkv_ref[:, 2 * hidden + h * head_dim:2 * hidden + (h + 1) * head_dim]

        # Fold 1/sqrt(Dh) into q (S*Dh muls instead of S*S on the scores).
        qs = (q * scale).astype(q.dtype)

        # scores = q @ k^T  (f32 MXU accumulation), + broadcast additive mask.
        s = lax.dot_general(qs, k, (((1,), (1,)), ((), ())),
                            preferred_element_type=jnp.float32)
        s = s + mask

        # softmax over keys (statistics in f32); divide goes to the EUP slot.
        m = jnp.max(s, axis=-1, keepdims=True)
        p = jnp.exp(s - m)
        l = jnp.sum(p, axis=-1, keepdims=True)

        ctx = jnp.dot(p.astype(v.dtype), v, preferred_element_type=jnp.float32)
        parts.append(ctx * pl.reciprocal(l, approx=True))

    # One lane-dense (S, H) store instead of NH masked 64-lane stores.
    o_ref[...] = jnp.concatenate(parts, axis=-1).astype(o_ref.dtype)


def _self_output_kernel(x_ref, w_ref, b_ref, res_ref, g_ref, beta_ref, o_ref,
                        *, eps, inv_h):
    # dense + bias + residual; matmul operands stay in native dtype.
    h = jnp.dot(x_ref[...], w_ref[...], preferred_element_type=jnp.float32)
    h = h + b_ref[...].astype(jnp.float32) + res_ref[...].astype(jnp.float32)

    # Two-pass (centered) LayerNorm for numerical robustness.
    mean = jnp.sum(h, axis=-1, keepdims=True) * inv_h
    d = h - mean
    var = jnp.sum(d * d, axis=-1, keepdims=True) * inv_h
    out = d * lax.rsqrt(var + eps)
    out = out * g_ref[...].astype(jnp.float32) + beta_ref[...].astype(jnp.float32)
    o_ref[...] = out.astype(o_ref.dtype)


# ------------------------------ pallas wrappers ----------------------------

def _qkv_projection(x2d, wqkvT, bqkv2, *, tm, vmem_limit):
    T, H = x2d.shape
    H3 = wqkvT.shape[1]
    return pl.pallas_call(
        _qkv_kernel,
        out_shape=jax.ShapeDtypeStruct((T, H3), x2d.dtype),
        grid_spec=pltpu.PrefetchScalarGridSpec(
            num_scalar_prefetch=0,
            grid=(pl.cdiv(T, tm),),
            in_specs=[pl.BlockSpec((tm, H), lambda i: (i, 0)),
                      pl.BlockSpec((H, H3), lambda i: (0, 0)),   # resident weight
                      pl.BlockSpec((1, H3), lambda i: (0, 0))],
            out_specs=pl.BlockSpec((tm, H3), lambda i: (i, 0)),
        ),
        compiler_params=pltpu.CompilerParams(
            dimension_semantics=("parallel",),
            vmem_limit_bytes=vmem_limit),
    )(x2d, wqkvT, bqkv2)


def _attention(qkv3, mask2, *, num_heads, head_dim, hidden, scale, out_dtype,
               vmem_limit):
    B, S, H3 = qkv3.shape
    Mq = mask2.shape[1]                      # 1 (broadcast over queries) or S
    kernel = functools.partial(_attention_kernel, num_heads=num_heads,
                               head_dim=head_dim, hidden=hidden, scale=scale)
    return pl.pallas_call(
        kernel,
        out_shape=jax.ShapeDtypeStruct((B, S, hidden), out_dtype),
        grid_spec=pltpu.PrefetchScalarGridSpec(
            num_scalar_prefetch=0,
            grid=(B,),
            in_specs=[pl.BlockSpec((None, S, H3), lambda b: (b, 0, 0)),
                      pl.BlockSpec((None, Mq, S), lambda b: (b, 0, 0))],
            out_specs=pl.BlockSpec((None, S, hidden), lambda b: (b, 0, 0)),
        ),
        compiler_params=pltpu.CompilerParams(
            dimension_semantics=("parallel",),
            vmem_limit_bytes=vmem_limit),
    )(qkv3, mask2)


def _self_output(ctx2d, res2d, woT, bo2, gamma2, beta2, *, tm, eps, out_dtype,
                 vmem_limit):
    T, H = ctx2d.shape
    kernel = functools.partial(_self_output_kernel, eps=eps, inv_h=1.0 / H)
    tok = pl.BlockSpec((tm, H), lambda i: (i, 0))
    vec = pl.BlockSpec((1, H), lambda i: (0, 0))
    return pl.pallas_call(
        kernel,
        out_shape=jax.ShapeDtypeStruct((T, H), out_dtype),
        grid_spec=pltpu.PrefetchScalarGridSpec(
            num_scalar_prefetch=0,
            grid=(pl.cdiv(T, tm),),
            in_specs=[tok, pl.BlockSpec((H, H), lambda i: (0, 0)), vec,
                      tok, vec, vec],
            out_specs=tok,
        ),
        compiler_params=pltpu.CompilerParams(
            dimension_semantics=("parallel",),
            vmem_limit_bytes=vmem_limit),
    )(ctx2d, woT, bo2, res2d, gamma2, beta2)


# ------------------------------ module forward -----------------------------

def qil_bert_attention(hidden_states, attention_mask, params, *, num_heads,
                       eps=1e-12, tm_qkv=None, tm_out=None):
    """Forward pass of QILBertAttention (quant_mode=False, eval mode).

    hidden_states : [B, S, H]
    attention_mask: None, [B,1,1,S], [B,1,S,S], [B,1,S] or [B,S] additive mask
    params (pre-packed at parameter-prep time, NOT on the call path):
        wqkvT : [H, 3H]  = concat(Wq.T, Wk.T, Wv.T, axis=1)
        bqkv  : [3H]     = concat(bq, bk, bv)
        woT   : [H, H]   = Wo.T
        bo, gamma, beta : [H]
    Returns ((attention_output,), (None,), (None,)) mirroring the module.
    """
    B, S, H = hidden_states.shape
    assert H % num_heads == 0
    Dh = H // num_heads
    T = B * S
    dtype = hidden_states.dtype
    vmem_limit = _vmem_limit_bytes()

    if tm_qkv is None:
        tm_qkv = min(256, _round_up(T, 8))
    if tm_out is None:
        tm_out = min(128, _round_up(T, 8))   # smaller tile: f32 LN intermediate

    x2d = hidden_states.reshape(T, H)        # free row-major reshape
    bqkv2 = params["bqkv"].reshape(1, 3 * H)
    bo2 = params["bo"].reshape(1, H)
    gamma2 = params["gamma"].reshape(1, H)
    beta2 = params["beta"].reshape(1, H)

    # 1) fused Q|K|V projection --------------------------------------------
    qkv2d = _qkv_projection(x2d, params["wqkvT"], bqkv2, tm=tm_qkv,
                            vmem_limit=vmem_limit)
    qkv3 = qkv2d.reshape(B, S, 3 * H)        # free reshape, no transpose

    # 2) additive mask, never materialized at (B, S, S) unless given that way.
    if attention_mask is None:
        mask2 = jnp.zeros((B, 1, S), jnp.float32)
    else:
        am = attention_mask
        if am.ndim == 4:
            am = am[:, 0]            # (B,1,1,S)->(B,1,S) or (B,1,S,S)->(B,S,S)
        elif am.ndim == 2:
            am = am[:, None, :]      # (B,S)->(B,1,S)
        mask2 = am

    # scaled-dot-product attention, all heads of one batch per grid step.
    ctx3 = _attention(qkv3, mask2, num_heads=num_heads, head_dim=Dh, hidden=H,
                      scale=1.0 / math.sqrt(Dh), out_dtype=dtype,
                      vmem_limit=vmem_limit)
    ctx2d = ctx3.reshape(T, H)               # free reshape, no transpose

    # 3) output dense + residual + LayerNorm (QILBertSelfOutput) -------------
    out2d = _self_output(ctx2d, x2d, params["woT"], bo2, gamma2, beta2,
                         tm=tm_out, eps=eps, out_dtype=dtype,
                         vmem_limit=vmem_limit)
    attention_output = out2d.reshape(B, S, H)

    # quant_mode=False -> QILQuantAct is a pass-through, scaling/offset None.
    return (attention_output,), (None,), (None,)


# --------------------------------- reference --------------------------------

def _reference(hidden_states, attention_mask, wq, wk, wv, wo,
               bq, bk, bv, bo, gamma, beta, num_heads, eps):
    B, S, H = hidden_states.shape
    Dh = H // num_heads
    x = hidden_states.astype(jnp.float32)
    q = x @ wq.T + bq
    k = x @ wk.T + bk
    v = x @ wv.T + bv

    def heads(a):
        return a.reshape(B, S, num_heads, Dh).transpose(0, 2, 1, 3)

    qh, kh, vh = heads(q), heads(k), heads(v)
    scores = jnp.einsum("bhqd,bhkd->bhqk", qh, kh) / math.sqrt(Dh)
    if attention_mask is not None:
        scores = scores + attention_mask.astype(jnp.float32)
    probs = jax.nn.softmax(scores, axis=-1)
    ctx = jnp.einsum("bhqk,bhkd->bhqd", probs, vh)
    ctx = ctx.transpose(0, 2, 1, 3).reshape(B, S, H)
    h = ctx @ wo.T + bo + x
    mean = h.mean(-1, keepdims=True)
    var = ((h - mean) ** 2).mean(-1, keepdims=True)
    return (h - mean) / jnp.sqrt(var + eps) * gamma + beta


# ----------------------------------- main -----------------------------------

if __name__ == "__main__":
    B, S, H, NH = 2, 8, 32, 4
    key = jax.random.PRNGKey(0)
    ks = jax.random.split(key, 10)

    hidden_states = jax.random.normal(ks[0], (B, S, H), dtype=jnp.float32)

    sc = 1.0 / math.sqrt(H)
    wq = jax.random.normal(ks[1], (H, H), jnp.float32) * sc
    wk = jax.random.normal(ks[2], (H, H), jnp.float32) * sc
    wv = jax.random.normal(ks[3], (H, H), jnp.float32) * sc
    wo = jax.random.normal(ks[4], (H, H), jnp.float32) * sc
    bq = jax.random.normal(ks[5], (H,), jnp.float32) * 0.02
    bk = jax.random.normal(ks[6], (H,), jnp.float32) * 0.02
    bv = jax.random.normal(ks[7], (H,), jnp.float32) * 0.02
    bo = jax.random.normal(ks[8], (H,), jnp.float32) * 0.02
    gamma = jnp.ones((H,), jnp.float32)
    beta = jnp.zeros((H,), jnp.float32)

    # Additive HF-style attention mask [B, 1, 1, S]: mask the last 2 keys of batch 1.
    mask = jnp.zeros((B, 1, 1, S), jnp.float32)
    mask = mask.at[1, 0, 0, S - 2:].set(-1e9)

    # Weights packed ONCE at parameter-prep time (not on the call path):
    # Q|K|V pre-transposed and concatenated into a single (H, 3H) matmul.
    params = {
        "wqkvT": jnp.concatenate([wq.T, wk.T, wv.T], axis=1),
        "bqkv": jnp.concatenate([bq, bk, bv]),
        "woT": wo.T,
        "bo": bo,
        "gamma": gamma,
        "beta": beta,
    }

    fwd = jax.jit(functools.partial(qil_bert_attention, num_heads=NH, eps=1e-12))
    outputs, scaling_factors, offsets = fwd(hidden_states, mask, params)
    out = jax.block_until_ready(outputs[0])

    ref = _reference(hidden_states, mask, wq, wk, wv, wo,
                     bq, bk, bv, bo, gamma, beta, NH, 1e-12)
    assert out.shape == (B, S, H)
    assert scaling_factors[0] is None and offsets[0] is None
    # Tolerance accounts for the EUP approximate reciprocal in the softmax
    # normalization (pl.reciprocal(approx=True)); everything else is f32-exact.
    assert jnp.allclose(out, ref, atol=1e-2, rtol=1e-2), "mismatch vs reference"

    print("KERNEL_OK")
</pallas_src>

<mosaic_0001>
module attributes {stable_mosaic.version = 11 : i64} {
  func.func @_qkv_kernel(%arg0: i32, %arg1: memref<16x32xf32, #tpu.memory_space<vmem>>, %arg2: memref<32x96xf32, #tpu.memory_space<vmem>>, %arg3: memref<1x96xf32, #tpu.memory_space<vmem>>, %arg4: memref<16x96xf32, #tpu.memory_space<vmem>>) attributes {dimension_semantics = [#tpu.dimension_semantics<parallel>], iteration_bounds = array<i64: 1>, scalar_prefetch = 0 : i64, scratch_operands = 0 : i64, tpu.core_type = #tpu.core_type<tc>, window_params = [{transform_indices = @transform_0, window_bounds = array<i64: 16, 32>}, {pipeline_mode = #tpu.pipeline_mode<synchronous>, transform_indices = @transform_1, window_bounds = array<i64: 32, 96>}, {pipeline_mode = #tpu.pipeline_mode<synchronous>, transform_indices = @transform_2, window_bounds = array<i64: 1, 96>}, {transform_indices = @transform_3, window_bounds = array<i64: 16, 96>}]} {
    %c0 = arith.constant 0 : index
    %c0_0 = arith.constant 0 : index
    %0 = vector.load %arg1[%c0, %c0_0] : memref<16x32xf32, #tpu.memory_space<vmem>>, vector<16x32xf32>
    %c0_1 = arith.constant 0 : index
    %c0_2 = arith.constant 0 : index
    %1 = vector.load %arg2[%c0_1, %c0_2] : memref<32x96xf32, #tpu.memory_space<vmem>>, vector<32x96xf32>
    %cst = arith.constant dense<0.000000e+00> : vector<16x96xf32>
    %2 = tpu.matmul %0, %1, %cst {dimension_numbers = #tpu.dot_dimension_numbers<[1], [0], [0], [1], [0, 0, 1, 1], [], []>} : vector<16x32xf32>, vector<32x96xf32>, vector<16x96xf32> -> vector<16x96xf32>
    %c0_3 = arith.constant 0 : index
    %c0_4 = arith.constant 0 : index
    %3 = vector.load %arg3[%c0_3, %c0_4] : memref<1x96xf32, #tpu.memory_space<vmem>>, vector<1x96xf32>
    %4 = vector.broadcast %3 : vector<1x96xf32> to vector<16x96xf32>
    %5 = arith.addf %2, %4 : vector<16x96xf32>
    %c0_5 = arith.constant 0 : index
    %c0_6 = arith.constant 0 : index
    %6 = vector.load %arg4[%c0_5, %c0_6] : memref<16x96xf32, #tpu.memory_space<vmem>>, vector<16x96xf32>
    tpu.vector_store %arg4[%c0_5, %c0_6], %5 {strides = array<i32>} : memref<16x96xf32, #tpu.memory_space<vmem>>, vector<16x96xf32>,
    return
  }
  func.func @transform_0(%arg0: i32) -> (i32, i32) {
    %c0_i32 = arith.constant 0 : i32
    %c0_i32_0 = arith.constant 0 : i32
    return %arg0, %c0_i32 : i32, i32
  }
  func.func @transform_1(%arg0: i32) -> (i32, i32) {
    %c0_i32 = arith.constant 0 : i32
    %c0_i32_0 = arith.constant 0 : i32
    %c0_i32_1 = arith.constant 0 : i32
    return %c0_i32, %c0_i32_0 : i32, i32
  }
  func.func @transform_2(%arg0: i32) -> (i32, i32) {
    %c0_i32 = arith.constant 0 : i32
    %c0_i32_0 = arith.constant 0 : i32
    %c0_i32_1 = arith.constant 0 : i32
    return %c0_i32, %c0_i32_0 : i32, i32
  }
  func.func @transform_3(%arg0: i32) -> (i32, i32) {
    %c0_i32 = arith.constant 0 : i32
    %c0_i32_0 = arith.constant 0 : i32
    return %arg0, %c0_i32 : i32, i32
  }
}

module attributes {stable_mosaic.version = 11 : i64} {
  func.func @_self_output_kernel(%arg0: i32, %arg1: memref<16x32xf32, #tpu.memory_space<vmem>>, %arg2: memref<32x32xf32, #tpu.memory_space<vmem>>, %arg3: memref<1x32xf32, #tpu.memory_space<vmem>>, %arg4: memref<16x32xf32, #tpu.memory_space<vmem>>, %arg5: memref<1x32xf32, #tpu.memory_space<vmem>>, %arg6: memref<1x32xf32, #tpu.memory_space<vmem>>, %arg7: memref<16x32xf32, #tpu.memory_space<vmem>>) attributes {dimension_semantics = [#tpu.dimension_semantics<parallel>], iteration_bounds = array<i64: 1>, scalar_prefetch = 0 : i64, scratch_operands = 0 : i64, tpu.core_type = #tpu.core_type<tc>, window_params = [{transform_indices = @transform_0, window_bounds = array<i64: 16, 32>}, {pipeline_mode = #tpu.pipeline_mode<synchronous>, transform_indices = @transform_1, window_bounds = array<i64: 32, 32>}, {pipeline_mode = #tpu.pipeline_mode<synchronous>, transform_indices = @transform_2, window_bounds = array<i64: 1, 32>}, {transform_indices = @transform_3, window_bounds = array<i64: 16, 32>}, {pipeline_mode = #tpu.pipeline_mode<synchronous>, transform_indices = @transform_4, window_bounds = array<i64: 1, 32>}, {pipeline_mode = #tpu.pipeline_mode<synchronous>, transform_indices = @transform_5, window_bounds = array<i64: 1, 32>}, {transform_indices = @transform_6, window_bounds = array<i64: 16, 32>}]} {
    %c0 = arith.constant 0 : index
    %c0_0 = arith.constant 0 : index
    %0 = vector.load %arg1[%c0, %c0_0] : memref<16x32xf32, #tpu.memory_space<vmem>>, vector<16x32xf32>
    %c0_1 = arith.constant 0 : index
    %c0_2 = arith.constant 0 : index
    %1 = vector.load %arg2[%c0_1, %c0_2] : memref<32x32xf32, #tpu.memory_space<vmem>>, vector<32x32xf32>
    %cst = arith.constant dense<0.000000e+00> : vector<16x32xf32>
    %2 = tpu.matmul %0, %1, %cst {dimension_numbers = #tpu.dot_dimension_numbers<[1], [0], [0], [1], [0, 0, 1, 1], [], []>} : vector<16x32xf32>, vector<32x32xf32>, vector<16x32xf32> -> vector<16x32xf32>
    %c0_3 = arith.constant 0 : index
    %c0_4 = arith.constant 0 : index
    %3 = vector.load %arg3[%c0_3, %c0_4] : memref<1x32xf32, #tpu.memory_space<vmem>>, vector<1x32xf32>
    %4 = vector.broadcast %3 : vector<1x32xf32> to vector<16x32xf32>
    %5 = arith.addf %2, %4 : vector<16x32xf32>
    %c0_5 = arith.constant 0 : index
    %c0_6 = arith.constant 0 : index
    %6 = vector.load %arg4[%c0_5, %c0_6] : memref<16x32xf32, #tpu.memory_space<vmem>>, vector<16x32xf32>
    %7 = arith.addf %5, %6 : vector<16x32xf32>
    %cst_7 = arith.constant dense<0.000000e+00> : vector<16xf32>
    %8 = vector.multi_reduction <add>, %7, %cst_7 [1] : vector<16x32xf32> to vector<16xf32>
    %9 = vector.shape_cast %8 : vector<16xf32> to vector<16x1xf32>
    %cst_8 = arith.constant 3.125000e-02 : f32
    %10 = vector.broadcast %cst_8 : f32 to vector<16x1xf32>
    %11 = arith.mulf %9, %10 : vector<16x1xf32>
    %12 = vector.broadcast %11 : vector<16x1xf32> to vector<16x32xf32>
    %13 = arith.subf %7, %12 : vector<16x32xf32>
    %14 = arith.mulf %13, %13 : vector<16x32xf32>
    %cst_9 = arith.constant dense<0.000000e+00> : vector<16xf32>
    %15 = vector.multi_reduction <add>, %14, %cst_9 [1] : vector<16x32xf32> to vector<16xf32>
    %16 = vector.shape_cast %15 : vector<16xf32> to vector<16x1xf32>
    %cst_10 = arith.constant 3.125000e-02 : f32
    %17 = vector.broadcast %cst_10 : f32 to vector<16x1xf32>
    %18 = arith.mulf %16, %17 : vector<16x1xf32>
    %cst_11 = arith.constant 9.99999996E-13 : f32
    %19 = vector.broadcast %cst_11 : f32 to vector<16x1xf32>
    %20 = arith.addf %18, %19 : vector<16x1xf32>
    %21 = math.rsqrt %20 : vector<16x1xf32>
    %22 = vector.broadcast %21 : vector<16x1xf32> to vector<16x32xf32>
    %23 = arith.mulf %13, %22 : vector<16x32xf32>
    %c0_12 = arith.constant 0 : index
    %c0_13 = arith.constant 0 : index
    %24 = vector.load %arg5[%c0_12, %c0_13] : memref<1x32xf32, #tpu.memory_space<vmem>>, vector<1x32xf32>
    %25 = vector.broadcast %24 : vector<1x32xf32> to vector<16x32xf32>
    %26 = arith.mulf %23, %25 : vector<16x32xf32>
    %c0_14 = arith.constant 0 : index
    %c0_15 = arith.constant 0 : index
    %27 = vector.load %arg6[%c0_14, %c0_15] : memref<1x32xf32, #tpu.memory_space<vmem>>, vector<1x32xf32>
    %28 = vector.broadcast %27 : vector<1x32xf32> to vector<16x32xf32>
    %29 = arith.addf %26, %28 : vector<16x32xf32>
    %c0_16 = arith.constant 0 : index
    %c0_17 = arith.constant 0 : index
    %30 = vector.load %arg7[%c0_16, %c0_17] : memref<16x32xf32, #tpu.memory_space<vmem>>, vector<16x32xf32>
    tpu.vector_store %arg7[%c0_16, %c0_17], %29 {strides = array<i32>} : memref<16x32xf32, #tpu.memory_space<vmem>>, vector<16x32xf32>,
    return
  }
  func.func @transform_0(%arg0: i32) -> (i32, i32) {
    %c0_i32 = arith.constant 0 : i32
    %c0_i32_0 = arith.constant 0 : i32
    return %arg0, %c0_i32 : i32, i32
  }
  func.func @transform_1(%arg0: i32) -> (i32, i32) {
    %c0_i32 = arith.constant 0 : i32
    %c0_i32_0 = arith.constant 0 : i32
    %c0_i32_1 = arith.constant 0 : i32
    return %c0_i32, %c0_i32_0 : i32, i32
  }
  func.func @transform_2(%arg0: i32) -> (i32, i32) {
    %c0_i32 = arith.constant 0 : i32
    %c0_i32_0 = arith.constant 0 : i32
    %c0_i32_1 = arith.constant 0 : i32
    return %c0_i32, %c0_i32_0 : i32, i32
  }
  func.func @transform_3(%arg0: i32) -> (i32, i32) {
    %c0_i32 = arith.constant 0 : i32
    %c0_i32_0 = arith.constant 0 : i32
    return %arg0, %c0_i32 : i32, i32
  }
  func.func @transform_4(%arg0: i32) -> (i32, i32) {
    %c0_i32 = arith.constant 0 : i32
    %c0_i32_0 = arith.constant 0 : i32
    %c0_i32_1 = arith.constant 0 : i32
    return %c0_i32, %c0_i32_0 : i32, i32
  }
  func.func @transform_5(%arg0: i32) -> (i32, i32) {
    %c0_i32 = arith.constant 0 : i32
    %c0_i32_0 = arith.constant 0 : i32
    %c0_i32_1 = arith.constant 0 : i32
    return %c0_i32, %c0_i32_0 : i32, i32
  }
  func.func @transform_6(%arg0: i32) -> (i32, i32) {
    %c0_i32 = arith.constant 0 : i32
    %c0_i32_0 = arith.constant 0 : i32
    return %arg0, %c0_i32 : i32, i32
  }
}

module attributes {stable_mosaic.version = 11 : i64} {
  func.func @_attention_kernel(%arg0: i32, %arg1: memref<1x8x96xf32, #tpu.memory_space<vmem>>, %arg2: memref<1x1x8xf32, #tpu.memory_space<vmem>>, %arg3: memref<1x8x32xf32, #tpu.memory_space<vmem>>) attributes {dimension_semantics = [#tpu.dimension_semantics<parallel>], iteration_bounds = array<i64: 2>, scalar_prefetch = 0 : i64, scratch_operands = 0 : i64, tpu.core_type = #tpu.core_type<tc>, window_params = [{transform_indices = @transform_0, window_bounds = array<i64: 1, 8, 96>}, {transform_indices = @transform_1, window_bounds = array<i64: 1, 1, 8>}, {transform_indices = @transform_2, window_bounds = array<i64: 1, 8, 32>}]} {
    %c0 = arith.constant 0 : index
    %c0_0 = arith.constant 0 : index
    %c0_1 = arith.constant 0 : index
    %0 = vector.load %arg2[%c0, %c0_0, %c0_1] : memref<1x1x8xf32, #tpu.memory_space<vmem>>, vector<1x1x8xf32>
    %1 = vector.shape_cast %0 : vector<1x1x8xf32> to vector<1x8xf32>
    %c0_2 = arith.constant 0 : index
    %c0_3 = arith.constant 0 : index
    %c0_4 = arith.constant 0 : index
    %2 = vector.load %arg1[%c0_2, %c0_3, %c0_4] : memref<1x8x96xf32, #tpu.memory_space<vmem>>, vector<1x8x8xf32>
    %3 = vector.shape_cast %2 : vector<1x8x8xf32> to vector<8x8xf32>
    %c0_5 = arith.constant 0 : index
    %c0_6 = arith.constant 0 : index
    %c32 = arith.constant 32 : index
    %4 = vector.load %arg1[%c0_5, %c0_6, %c32] : memref<1x8x96xf32, #tpu.memory_space<vmem>>, vector<1x8x8xf32>
    %5 = vector.shape_cast %4 : vector<1x8x8xf32> to vector<8x8xf32>
    %c0_7 = arith.constant 0 : index
    %c0_8 = arith.constant 0 : index
    %c64 = arith.constant 64 : index
    %6 = vector.load %arg1[%c0_7, %c0_8, %c64] : memref<1x8x96xf32, #tpu.memory_space<vmem>>, vector<1x8x8xf32>
    %7 = vector.shape_cast %6 : vector<1x8x8xf32> to vector<8x8xf32>
    %cst = arith.constant 0.353553385 : f32
    %8 = vector.broadcast %cst : f32 to vector<8x8xf32>
    %9 = arith.mulf %3, %8 : vector<8x8xf32>
    %cst_9 = arith.constant dense<0.000000e+00> : vector<8x8xf32>
    %10 = tpu.matmul %9, %5, %cst_9 {dimension_numbers = #tpu.dot_dimension_numbers<[1], [1], [0], [0], [0, 0, 1, 0], [], []>} : vector<8x8xf32>, vector<8x8xf32>, vector<8x8xf32> -> vector<8x8xf32>
    %11 = vector.broadcast %1 : vector<1x8xf32> to vector<8x8xf32>
    %12 = arith.addf %10, %11 : vector<8x8xf32>
    %cst_10 = arith.constant dense<0xFF800000> : vector<8xf32>
    %13 = vector.multi_reduction <maximumf>, %12, %cst_10 [1] : vector<8x8xf32> to vector<8xf32>
    %14 = vector.shape_cast %13 : vector<8xf32> to vector<8x1xf32>
    %15 = vector.broadcast %14 : vector<8x1xf32> to vector<8x8xf32>
    %16 = arith.subf %12, %15 : vector<8x8xf32>
    %17 = math.exp %16 : vector<8x8xf32>
    %cst_11 = arith.constant dense<0.000000e+00> : vector<8xf32>
    %18 = vector.multi_reduction <add>, %17, %cst_11 [1] : vector<8x8xf32> to vector<8xf32>
    %19 = vector.shape_cast %18 : vector<8xf32> to vector<8x1xf32>
    %cst_12 = arith.constant dense<0.000000e+00> : vector<8x8xf32>
    %20 = tpu.matmul %17, %7, %cst_12 {dimension_numbers = #tpu.dot_dimension_numbers<[1], [0], [0], [1], [0, 0, 1, 1], [], []>} : vector<8x8xf32>, vector<8x8xf32>, vector<8x8xf32> -> vector<8x8xf32>
    %21 = tpu.reciprocal %19 {approx = true} : vector<8x1xf32> -> vector<8x1xf32>
    %22 = vector.broadcast %21 : vector<8x1xf32> to vector<8x8xf32>
    %23 = arith.mulf %20, %22 : vector<8x8xf32>
    %c0_13 = arith.constant 0 : index
    %c0_14 = arith.constant 0 : index
    %c8 = arith.constant 8 : index
    %24 = vector.load %arg1[%c0_13, %c0_14, %c8] : memref<1x8x96xf32, #tpu.memory_space<vmem>>, vector<1x8x8xf32>
    %25 = vector.shape_cast %24 : vector<1x8x8xf32> to vector<8x8xf32>
    %c0_15 = arith.constant 0 : index
    %c0_16 = arith.constant 0 : index
    %c40 = arith.constant 40 : index
    %26 = vector.load %arg1[%c0_15, %c0_16, %c40] : memref<1x8x96xf32, #tpu.memory_space<vmem>>, vector<1x8x8xf32>
    %27 = vector.shape_cast %26 : vector<1x8x8xf32> to vector<8x8xf32>
    %c0_17 = arith.constant 0 : index
    %c0_18 = arith.constant 0 : index
    %c72 = arith.constant 72 : index
    %28 = vector.load %arg1[%c0_17, %c0_18, %c72] : memref<1x8x96xf32, #tpu.memory_space<vmem>>, vector<1x8x8xf32>
    %29 = vector.shape_cast %28 : vector<1x8x8xf32> to vector<8x8xf32>
    %cst_19 = arith.constant 0.353553385 : f32
    %30 = vector.broadcast %cst_19 : f32 to vector<8x8xf32>
    %31 = arith.mulf %25, %30 : vector<8x8xf32>
    %cst_20 = arith.constant dense<0.000000e+00> : vector<8x8xf32>
    %32 = tpu.matmul %31, %27, %cst_20 {dimension_numbers = #tpu.dot_dimension_numbers<[1], [1], [0], [0], [0, 0, 1, 0], [], []>} : vector<8x8xf32>, vector<8x8xf32>, vector<8x8xf32> -> vector<8x8xf32>
    %33 = vector.broadcast %1 : vector<1x8xf32> to vector<8x8xf32>
    %34 = arith.addf %32, %33 : vector<8x8xf32>
    %cst_21 = arith.constant dense<0xFF800000> : vector<8xf32>
    %35 = vector.multi_reduction <maximumf>, %34, %cst_21 [1] : vector<8x8xf32> to vector<8xf32>
    %36 = vector.shape_cast %35 : vector<8xf32> to vector<8x1xf32>
    %37 = vector.broadcast %36 : vector<8x1xf32> to vector<8x8xf32>
    %38 = arith.subf %34, %37 : vector<8x8xf32>
    %39 = math.exp %38 : vector<8x8xf32>
    %cst_22 = arith.constant dense<0.000000e+00> : vector<8xf32>
    %40 = vector.multi_reduction <add>, %39, %cst_22 [1] : vector<8x8xf32> to vector<8xf32>
    %41 = vector.shape_cast %40 : vector<8xf32> to vector<8x1xf32>
    %cst_23 = arith.constant dense<0.000000e+00> : vector<8x8xf32>
    %42 = tpu.matmul %39, %29, %cst_23 {dimension_numbers = #tpu.dot_dimension_numbers<[1], [0], [0], [1], [0, 0, 1, 1], [], []>} : vector<8x8xf32>, vector<8x8xf32>, vector<8x8xf32> -> vector<8x8xf32>
    %43 = tpu.reciprocal %41 {approx = true} : vector<8x1xf32> -> vector<8x1xf32>
    %44 = vector.broadcast %43 : vector<8x1xf32> to vector<8x8xf32>
    %45 = arith.mulf %42, %44 : vector<8x8xf32>
    %c0_24 = arith.constant 0 : index
    %c0_25 = arith.constant 0 : index
    %c16 = arith.constant 16 : index
    %46 = vector.load %arg1[%c0_24, %c0_25, %c16] : memref<1x8x96xf32, #tpu.memory_space<vmem>>, vector<1x8x8xf32>
    %47 = vector.shape_cast %46 : vector<1x8x8xf32> to vector<8x8xf32>
    %c0_26 = arith.constant 0 : index
    %c0_27 = arith.constant 0 : index
    %c48 = arith.constant 48 : index
    %48 = vector.load %arg1[%c0_26, %c0_27, %c48] : memref<1x8x96xf32, #tpu.memory_space<vmem>>, vector<1x8x8xf32>
    %49 = vector.shape_cast %48 : vector<1x8x8xf32> to vector<8x8xf32>
    %c0_28 = arith.constant 0 : index
    %c0_29 = arith.constant 0 : index
    %c80 = arith.constant 80 : index
    %50 = vector.load %arg1[%c0_28, %c0_29, %c80] : memref<1x8x96xf32, #tpu.memory_space<vmem>>, vector<1x8x8xf32>
    %51 = vector.shape_cast %50 : vector<1x8x8xf32> to vector<8x8xf32>
    %cst_30 = arith.constant 0.353553385 : f32
    %52 = vector.broadcast %cst_30 : f32 to vector<8x8xf32>
    %53 = arith.mulf %47, %52 : vector<8x8xf32>
    %cst_31 = arith.constant dense<0.000000e+00> : vector<8x8xf32>
    %54 = tpu.matmul %53, %49, %cst_31 {dimension_numbers = #tpu.dot_dimension_numbers<[1], [1], [0], [0], [0, 0, 1, 0], [], []>} : vector<8x8xf32>, vector<8x8xf32>, vector<8x8xf32> -> vector<8x8xf32>
    %55 = vector.broadcast %1 : vector<1x8xf32> to vector<8x8xf32>
    %56 = arith.addf %54, %55 : vector<8x8xf32>
    %cst_32 = arith.constant dense<0xFF800000> : vector<8xf32>
    %57 = vector.multi_reduction <maximumf>, %56, %cst_32 [1] : vector<8x8xf32> to vector<8xf32>
    %58 = vector.shape_cast %57 : vector<8xf32> to vector<8x1xf32>
    %59 = vector.broadcast %58 : vector<8x1xf32> to vector<8x8xf32>
    %60 = arith.subf %56, %59 : vector<8x8xf32>
    %61 = math.exp %60 : vector<8x8xf32>
    %cst_33 = arith.constant dense<0.000000e+00> : vector<8xf32>
    %62 = vector.multi_reduction <add>, %61, %cst_33 [1] : vector<8x8xf32> to vector<8xf32>
    %63 = vector.shape_cast %62 : vector<8xf32> to vector<8x1xf32>
    %cst_34 = arith.constant dense<0.000000e+00> : vector<8x8xf32>
    %64 = tpu.matmul %61, %51, %cst_34 {dimension_numbers = #tpu.dot_dimension_numbers<[1], [0], [0], [1], [0, 0, 1, 1], [], []>} : vector<8x8xf32>, vector<8x8xf32>, vector<8x8xf32> -> vector<8x8xf32>
    %65 = tpu.reciprocal %63 {approx = true} : vector<8x1xf32> -> vector<8x1xf32>
    %66 = vector.broadcast %65 : vector<8x1xf32> to vector<8x8xf32>
    %67 = arith.mulf %64, %66 : vector<8x8xf32>
    %c0_35 = arith.constant 0 : index
    %c0_36 = arith.constant 0 : index
    %c24 = arith.constant 24 : index
    %68 = vector.load %arg1[%c0_35, %c0_36, %c24] : memref<1x8x96xf32, #tpu.memory_space<vmem>>, vector<1x8x8xf32>
    %69 = vector.shape_cast %68 : vector<1x8x8xf32> to vector<8x8xf32>
    %c0_37 = arith.constant 0 : index
    %c0_38 = arith.constant 0 : index
    %c56 = arith.constant 56 : index
    %70 = vector.load %arg1[%c0_37, %c0_38, %c56] : memref<1x8x96xf32, #tpu.memory_space<vmem>>, vector<1x8x8xf32>
    %71 = vector.shape_cast %70 : vector<1x8x8xf32> to vector<8x8xf32>
    %c0_39 = arith.constant 0 : index
    %c0_40 = arith.constant 0 : index
    %c88 = arith.constant 88 : index
    %72 = vector.load %arg1[%c0_39, %c0_40, %c88] : memref<1x8x96xf32, #tpu.memory_space<vmem>>, vector<1x8x8xf32>
    %73 = vector.shape_cast %72 : vector<1x8x8xf32> to vector<8x8xf32>
    %cst_41 = arith.constant 0.353553385 : f32
    %74 = vector.broadcast %cst_41 : f32 to vector<8x8xf32>
    %75 = arith.mulf %69, %74 : vector<8x8xf32>
    %cst_42 = arith.constant dense<0.000000e+00> : vector<8x8xf32>
    %76 = tpu.matmul %75, %71, %cst_42 {dimension_numbers = #tpu.dot_dimension_numbers<[1], [1], [0], [0], [0, 0, 1, 0], [], []>} : vector<8x8xf32>, vector<8x8xf32>, vector<8x8xf32> -> vector<8x8xf32>
    %77 = vector.broadcast %1 : vector<1x8xf32> to vector<8x8xf32>
    %78 = arith.addf %76, %77 : vector<8x8xf32>
    %cst_43 = arith.constant dense<0xFF800000> : vector<8xf32>
    %79 = vector.multi_reduction <maximumf>, %78, %cst_43 [1] : vector<8x8xf32> to vector<8xf32>
    %80 = vector.shape_cast %79 : vector<8xf32> to vector<8x1xf32>
    %81 = vector.broadcast %80 : vector<8x1xf32> to vector<8x8xf32>
    %82 = arith.subf %78, %81 : vector<8x8xf32>
    %83 = math.exp %82 : vector<8x8xf32>
    %cst_44 = arith.constant dense<0.000000e+00> : vector<8xf32>
    %84 = vector.multi_reduction <add>, %83, %cst_44 [1] : vector<8x8xf32> to vector<8xf32>
    %85 = vector.shape_cast %84 : vector<8xf32> to vector<8x1xf32>
    %cst_45 = arith.constant dense<0.000000e+00> : vector<8x8xf32>
    %86 = tpu.matmul %83, %73, %cst_45 {dimension_numbers = #tpu.dot_dimension_numbers<[1], [0], [0], [1], [0, 0, 1, 1], [], []>} : vector<8x8xf32>, vector<8x8xf32>, vector<8x8xf32> -> vector<8x8xf32>
    %87 = tpu.reciprocal %85 {approx = true} : vector<8x1xf32> -> vector<8x1xf32>
    %88 = vector.broadcast %87 : vector<8x1xf32> to vector<8x8xf32>
    %89 = arith.mulf %86, %88 : vector<8x8xf32>
    %90 = tpu.concatenate %23, %45, %67, %89 in 1 : vector<8x8xf32>, vector<8x8xf32>, vector<8x8xf32>, vector<8x8xf32> -> vector<8x32xf32>
    %c0_46 = arith.constant 0 : index
    %c0_47 = arith.constant 0 : index
    %c0_48 = arith.constant 0 : index
    %91 = vector.load %arg3[%c0_46, %c0_47, %c0_48] : memref<1x8x32xf32, #tpu.memory_space<vmem>>, vector<1x8x32xf32>
    %92 = vector.shape_cast %91 : vector<1x8x32xf32> to vector<8x32xf32>
    %93 = vector.shape_cast %90 : vector<8x32xf32> to vector<1x8x32xf32>
    tpu.vector_store %arg3[%c0_46, %c0_47, %c0_48], %93 {strides = array<i32>} : memref<1x8x32xf32, #tpu.memory_space<vmem>>, vector<1x8x32xf32>,
    return
  }
  func.func @transform_0(%arg0: i32) -> (i32, i32, i32) {
    %c0_i32 = arith.constant 0 : i32
    %c0_i32_0 = arith.constant 0 : i32
    %c0_i32_1 = arith.constant 0 : i32
    return %arg0, %c0_i32, %c0_i32_0 : i32, i32, i32
  }
  func.func @transform_1(%arg0: i32) -> (i32, i32, i32) {
    %c0_i32 = arith.constant 0 : i32
    %c0_i32_0 = arith.constant 0 : i32
    %c0_i32_1 = arith.constant 0 : i32
    return %arg0, %c0_i32, %c0_i32_0 : i32, i32, i32
  }
  func.func @transform_2(%arg0: i32) -> (i32, i32, i32) {
    %c0_i32 = arith.constant 0 : i32
    %c0_i32_0 = arith.constant 0 : i32
    %c0_i32_1 = arith.constant 0 : i32
    return %arg0, %c0_i32, %c0_i32_0 : i32, i32, i32
  }
}

</mosaic_0001>

<bundles_post_ra>
// kernel: qil_bert_attention.5
= control target key start
LH: loop header
LB: loop body
LE: loop exit
PB: predicated region body
PF: predicated region fallthrough
CT: control target
= control target key end

     0   :  { %11 = vsyncpa [#allocation3], 0  ;;  %s627_s0 = inlined_call_operand.hbm [shape: f32[16,32], index: 0, kind: input, shape index: {}]   ;;  %s628_s1 = inlined_call_operand.hbm [shape: f32[32,32], index: 1, kind: input, shape index: {}]   ;;  %s629_s2 = inlined_call_operand.hbm [shape: f32[1,32], index: 2, kind: input, shape index: {}]   ;;  %s630_s3 = inlined_call_operand.hbm [shape: f32[16,32], index: 3, kind: input, shape index: {}]   ;;  %s631_s4 = inlined_call_operand.hbm [shape: f32[1,32], index: 4, kind: input, shape index: {}]   ;;  %s632_s5 = inlined_call_operand.hbm [shape: f32[1,32], index: 5, kind: input, shape index: {}]   ;;  %s633_s6 = inlined_call_operand.hbm [shape: f32[16,32], index: 6, kind: output, shape index: {}]  }
   0x1   :  { %12 = vsyncpa [#allocation6], 0 }
   0x2   :  { %13 = vsyncpa [#allocation9], 0 }
   0x3   :  { %14 = vsyncpa [#allocation12], 0 }
   0x4   :  { %15 = vsyncpa [#allocation4], 0  ;;  %s472_s21 = smov [#allocation5]   ;;  %s473_s23 = smov [#allocation8]  }
   0x5   :  { %s33_s22 = sshll.u32 %s472_s21, 4  ;;  %s55_s24 = sshll.u32 %s473_s23, 4  ;;  %s34_s22 = int_to_ptr.vmem [resolvable:$true] %s33_s22  ;;  %s516_s24 = int_to_ptr.vmem [resolvable:$true] %s55_s24 }
   0x6   :  { %s308_s27 = scalar_lea.hbm %s628_s1, 512 }
   0x7   :  { %p309_p0 = scmp.ne.s32.totalorder %s628_s1, %s308_s27  ;;  %p312_p1 = scmp.lt.u32.totalorder %s308_s27, %s628_s1 }
   0x9   :  { %p314_p2 = pnand %p312_p1, %p309_p0 }
   0xb   :  { %317 = shalt.err (!%p314_p2)
}
   0xc   :  { %s318_s8 = scalar_lea.vmem %s34_s22, 512  ;;  %p323_p4 = scmp.lt.s32.totalorder %s34_s22, %s34_s22 }
   0xd   :  { %p319_p3 = scmp.ne.s32.totalorder %s34_s22, %s318_s8  ;;  %p324_p5 = scmp.lt.s32.totalorder %s318_s8, %s318_s8 }
   0xf   :  { %p325_p6 = por %p324_p5, %p323_p4 }
  0x11   :  { %p326_p7 = pnand %p325_p6, %p319_p3 }
  0x13   :  { %329 = shalt.err (!%p326_p7)
}
  0x14   :  { %s474_s9 = smov 128   ;;  %s475_s10 = smov 8  }
  0x15   :  { %39 = dma.hbm_to_vmem [thread:$0]  %s628_s1, 512, %s34_s22, [#allocation6], %s474_s9, %s474_s9, %s475_s10  }
  0x16   :  { %s330_s15 = scalar_lea.hbm %s630_s3, 256 }
  0x17   :  { %p331_p8 = scmp.ne.s32.totalorder %s630_s3, %s330_s15  ;;  %p334_p9 = scmp.lt.u32.totalorder %s330_s15, %s630_s3 }
  0x19   :  { %p336_p10 = pnand %p334_p9, %p331_p8 }
  0x1b   :  { %339 = shalt.err (!%p336_p10)
}
  0x1c   :  { %s340_s20 = scalar_lea.vmem %s516_s24, 256  ;;  %p345_p12 = scmp.lt.s32.totalorder %s516_s24, %s516_s24 }
  0x1d   :  { %p341_p11 = scmp.ne.s32.totalorder %s516_s24, %s340_s20  ;;  %p346_p13 = scmp.lt.s32.totalorder %s340_s20, %s340_s20 }
  0x1f   :  { %p347_p0 = por %p346_p13, %p345_p12 }
  0x21   :  { %p348_p1 = pnand %p347_p0, %p341_p11 }
  0x23   :  { %351 = shalt.err (!%p348_p1)
}
  0x24   :  { %61 = dma.hbm_to_vmem [thread:$0]  %s630_s3, 256, %s516_s24, [#allocation9], %s474_s9, %s474_s9, %s475_s10  }
  0x25   :  { %s476_s22 = smov [#allocation2]   ;;  %s477_s25 = smov [#allocation7]  }
  0x26   :  { %s21_s23 = sshll.u32 %s476_s22, 4  ;;  %s46_s26 = sshll.u32 %s477_s25, 4  ;;  %s22_s23 = int_to_ptr.vmem [resolvable:$true] %s21_s23  ;;  %s47_s26 = int_to_ptr.vmem [resolvable:$true] %s46_s26 }
  0x27   :  { %s352_s29 = scalar_lea.hbm %s627_s0, 256 }
  0x28   :  { %p353_p2 = scmp.ne.s32.totalorder %s627_s0, %s352_s29  ;;  %p356_p3 = scmp.lt.u32.totalorder %s352_s29, %s627_s0 }
  0x2a   :  { %p358_p4 = pnand %p356_p3, %p353_p2 }
  0x2c   :  { %361 = shalt.err (!%p358_p4)
}
  0x2d   :  { %s362_s3 = scalar_lea.vmem %s22_s23, 256  ;;  %p367_p6 = scmp.lt.s32.totalorder %s22_s23, %s22_s23 }
  0x2e   :  { %p363_p5 = scmp.ne.s32.totalorder %s22_s23, %s362_s3  ;;  %p368_p7 = scmp.lt.s32.totalorder %s362_s3, %s362_s3 }
  0x30   :  { %p369_p8 = por %p368_p7, %p367_p6 }
  0x32   :  { %p370_p9 = pnand %p369_p8, %p363_p5 }
  0x34   :  { %373 = shalt.err (!%p370_p9)
}
  0x35   :  { %27 = dma.hbm_to_vmem [thread:$0]  %s627_s0, 256, %s22_s23, [#allocation3], %s474_s9, %s474_s9, %s475_s10  }
  0x36   :  { %s374_s15 = scalar_lea.hbm %s629_s2, 16 }
  0x37   :  { %p375_p10 = scmp.ne.s32.totalorder %s629_s2, %s374_s15  ;;  %p378_p11 = scmp.lt.u32.totalorder %s374_s15, %s629_s2 }
  0x39   :  { %p380_p12 = pnand %p378_p11, %p375_p10 }
  0x3b   :  { %383 = shalt.err (!%p380_p12)
}
  0x3c   :  { %s384_s20 = scalar_lea.vmem %s47_s26, 16  ;;  %s388_s1 = scalar_lea.vmem %s47_s26, 32 }
  0x3d   :  { %p385_p13 = scmp.ne.s32.totalorder %s47_s26, %s384_s20  ;;  %p389_p0 = scmp.lt.s32.totalorder %s47_s26, %s47_s26 }
  0x3e   :  { %p390_p1 = scmp.lt.s32.totalorder %s388_s1, %s384_s20 }
  0x40   :  { %p391_p2 = por %p390_p1, %p389_p0 }
  0x42   :  { %p392_p3 = pnand %p391_p2, %p385_p13 }
  0x44   :  { %395 = shalt.err (!%p392_p3)
}
  0x45   :  { %49 = dma.hbm_to_vmem [thread:$0]  %s629_s2, 16, %s47_s26, [#allocation6]  }
  0x46   :  { %s478_s22 = smov [#allocation10]   ;;  %s479_s25 = smov [#allocation11]  }
  0x47   :  { %s68_s23 = sshll.u32 %s478_s22, 4  ;;  %s78_s27 = sshll.u32 %s479_s25, 4  ;;  %s69_s23 = int_to_ptr.vmem [resolvable:$true] %s68_s23  ;;  %s79_s27 = int_to_ptr.vmem [resolvable:$true] %s78_s27 }
  0x48   :  { %s396_s30 = scalar_lea.hbm %s631_s4, 16 }
  0x49   :  { %p397_p4 = scmp.ne.s32.totalorder %s631_s4, %s396_s30  ;;  %p400_p5 = scmp.lt.u32.totalorder %s396_s30, %s631_s4 }
  0x4b   :  { %p402_p6 = pnand %p400_p5, %p397_p4 }
  0x4d   :  { %405 = shalt.err (!%p402_p6)
}
  0x4e   :  { %s406_s2 = scalar_lea.vmem %s69_s23, 16  ;;  %s410_s26 = scalar_lea.vmem %s69_s23, 32 }
  0x4f   :  { %p407_p7 = scmp.ne.s32.totalorder %s69_s23, %s406_s2  ;;  %p411_p8 = scmp.lt.s32.totalorder %s69_s23, %s69_s23 }
  0x50   :  { %p412_p9 = scmp.lt.s32.totalorder %s410_s26, %s406_s2 }
  0x52   :  { %p413_p10 = por %p412_p9, %p411_p8 }
  0x54   :  { %p414_p11 = pnand %p413_p10, %p407_p7 }
  0x56   :  { %417 = shalt.err (!%p414_p11)
}
  0x57   :  { %71 = dma.hbm_to_vmem [thread:$0]  %s631_s4, 16, %s69_s23, [#allocation9]  }
  0x58   :  { %s418_s15 = scalar_lea.hbm %s632_s5, 16 }
  0x59   :  { %p419_p12 = scmp.ne.s32.totalorder %s632_s5, %s418_s15  ;;  %p422_p13 = scmp.lt.u32.totalorder %s418_s15, %s632_s5 }
  0x5b   :  { %p424_p0 = pnand %p422_p13, %p419_p12 }
  0x5d   :  { %427 = shalt.err (!%p424_p0)
}
  0x5e   :  { %s428_s20 = scalar_lea.vmem %s79_s27, 16  ;;  %s432_s1 = scalar_lea.vmem %s79_s27, 32 }
  0x5f   :  { %p429_p1 = scmp.ne.s32.totalorder %s79_s27, %s428_s20  ;;  %p433_p2 = scmp.lt.s32.totalorder %s79_s27, %s79_s27 }
  0x60   :  { %p434_p3 = scmp.lt.s32.totalorder %s432_s1, %s428_s20 }
  0x62   :  { %p435_p4 = por %p434_p3, %p433_p2 }
  0x64   :  { %p436_p5 = pnand %p435_p4, %p429_p1 }
  0x66   :  { %439 = shalt.err (!%p436_p5)
}
  0x67   :  { %81 = dma.hbm_to_vmem [thread:$0]  %s632_s5, 16, %s79_s27, [#allocation12]  }
  0x68   :  { %462 = dma.done.wait [#allocation3], 256  }
  0x69   :  { %463 = vsyncadd [#allocation3], 4294967040 }
  0x6a   :  { %464 = dma.done.wait [#allocation6], 528  }
  0x6b   :  { %465 = vsyncadd [#allocation6], 4294966768 }
  0x6c   :  { %466 = dma.done.wait [#allocation9], 272  }
  0x6d   :  { %467 = vsyncadd [#allocation9], 4294967024 }
  0x6e   :  { %468 = dma.done.wait [#allocation12], 16  }
  0x6f   :  { %469 = vsyncadd [#allocation12], 4294967280  ;;  %vm113_vm0 = vcmask 261120   ;;  %v102_v0 = vld [vmem:[#allocation5] sm:$0xff]  ;;  %v103_v1 = vld [vmem:[#allocation5 + $0x8] sm:$0xff]  ;;  %s480_s5 = smov [#allocation13]  }
  0x70   :  { %v104_v2 = vld [vmem:[#allocation5 + $0x10] sm:$0xff]  ;;  %v287_v3 = vpack.c.bf16 %v103_v1, %v102_v0  ;;  %v105_v4 = vld [vmem:[#allocation5 + $0x18] sm:$0xff]  ;;  %v265_v8 = vld [vmem:[#allocation7] ss:$0 sm:$0xff]  ;;  %s250_s21 = sshll.u32 %s480_s5, 4  ;;  %s251_s21 = int_to_ptr.vmem [resolvable:$true] %s250_s21 }
  0x71   :  { %v100_v5 = vld [vmem:[#allocation2] sm:$0xff]  ;;  %v291_v6 = vpack.c.bf16 %v105_v4, %v104_v2  ;;  %v101_v7 = vld [vmem:[#allocation2 + $0x8] sm:$0xff]  ;;  %v195_v11 = vld [vmem:[#allocation8] sm:$0xff]  ;;  %s440_s22 = scalar_lea.vmem %s251_s21, 256  ;;  %p445_p7 = scmp.lt.s32.totalorder %s251_s21, %s251_s21 }
  0x72   :  { %284 = vmatprep.mubr.msk.f32.mxu0 %vm113_vm0, %v100_v5  ;;  %288 = vmatprep.subr.bf16.mxu0 %v287_v3  ;;  %v196_v14 = vld [vmem:[#allocation8 + $0x8] sm:$0xff]  ;;  %v268_v36 = vld [vmem:[#allocation10] ss:$0 sm:$0xff]  ;;  %v269_v38 = vld [vmem:[#allocation11] ss:$0 sm:$0xff]  ;;  %p441_p6 = scmp.ne.s32.totalorder %s251_s21, %s440_s22  ;;  %p446_p8 = scmp.lt.s32.totalorder %s440_s22, %s440_s22 }
  0x73   :  { %290 = vmatpush3.bf16.msra.mxu0 %v287_v3 }
  0x74   :  { %292 = vmatprep.subr.bf16.mxu0 %v291_v6  ;;  %p447_p9 = por %p446_p8, %p445_p7 }
  0x76   :  { %p448_p10 = pnand %p447_p9, %p441_p6 }
  0x77   :  { %294 = vmatpush3.bf16.msra.mxu0 %v291_v6 }
  0x7a   :  { %285 = vmatmul.mubr.msk.f32.vlgmr.msra.gmra.mrb[0].mxu0 %vm113_vm0, %v101_v7 }
 0x14d   :  { %v286_v9 = vpop.f32.mrb[0].mxu0 }
 0x14e   :  { %v186_v10 = vpop.f32.mrb[1].mxu0  ;;  %v192_v12 = vadd.f32 %v286_v9, %v265_v8 }
 0x14f   :  { %v187_v13 = vadd.f32 %v265_v8, %v186_v10 }
 0x150   :  { %v198_v17 = vadd.f32 %v196_v14, %v192_v12 }
 0x151   :  { %v197_v15 = vadd.f32 %v195_v11, %v187_v13 }
 0x152   :  { %v202_v18 = vsel %vm113_vm0, %v198_v17, 0.0 }
 0x153   :  { %v199_v16 = vsel %vm113_vm0, %v197_v15, 0.0 }
 0x154   :  { %200 = vadd.xlane.f32.xlu0 %v199_v16 }
 0x158   :  { %203 = vadd.xlane.f32.xlu0 %v202_v18 }
 0x1e1   :  { %v201_v19 = vpop.xlane.xlu0 %200 }
 0x1e2   :  { %v205_v20 = vmul.f32 0.03125, %v201_v19 }
 0x1e4   :  { %v207_v21 = vsub.f32 %v197_v15, %v205_v20 }
 0x1e5   :  { %v204_v22 = vpop.xlane.xlu0 %203 }
 0x1e6   :  { %v206_v23 = vmul.f32 0.03125, %v204_v22  ;;  %v209_v24 = vmul.f32 %v207_v21, %v207_v21 }
 0x1e8   :  { %v208_v25 = vsub.f32 %v198_v17, %v206_v23  ;;  %v211_v26 = vsel %vm113_vm0, %v209_v24, 0.0 }
 0x1e9   :  { %212 = vadd.xlane.f32.xlu1 %v211_v26 }
 0x1ea   :  { %v210_v27 = vmul.f32 %v208_v25, %v208_v25 }
 0x1ec   :  { %v214_v28 = vsel %vm113_vm0, %v210_v27, 0.0 }
 0x1ed   :  { %215 = vadd.xlane.f32.xlu1 %v214_v28 }
 0x276   :  { %v213_v29 = vpop.xlane.xlu1 %212 }
 0x277   :  { %v217_v30 = vmul.f32 0.03125, %v213_v29 }
 0x279   :  { %v219_v31 = vadd.f32 1e-12, %v217_v30 }
 0x27a   :  { %v216_v32 = vpop.xlane.xlu1 %215 }
 0x27b   :  { %304 = vrsqrt.f32 %v219_v31  ;;  %v218_v33 = vmul.f32 0.03125, %v216_v32 }
 0x27d   :  { %v220_v34 = vadd.f32 1e-12, %v218_v33 }
 0x27f   :  { %306 = vrsqrt.f32 %v220_v34 }
 0x285   :  { %v305_v35 = vpop.eup %304 }
 0x286   :  { %v223_v37 = vmul.f32 %v305_v35, %v207_v21 }
 0x288   :  { %v232_v39 = vmul.f32 %v268_v36, %v223_v37 }
 0x289   :  { %v307_v40 = vpop.eup %306 }
 0x28a   :  { %v224_v41 = vmul.f32 %v307_v40, %v208_v25  ;;  %v241_v42 = vadd.f32 %v269_v38, %v232_v39 }
 0x28c   :  { %v233_v43 = vmul.f32 %v268_v36, %v224_v41  ;;  %243 = vst.msk [vmem:[#allocation13] sm:$0xff] %vm113_vm0, %v241_v42 }
 0x28e   :  { %v242_v44 = vadd.f32 %v269_v38, %v233_v43 }
 0x290   :  { %244 = vst.msk [vmem:[#allocation13 + $0x8] sm:$0xff] %vm113_vm0, %v242_v44 }
 0x291   :  { %451 = shalt.err (!%p448_p10)
}
 0x292   :  { %s452_s27 = scalar_lea.hbm %s633_s6, 256 }
 0x293   :  { %p453_p11 = scmp.ne.s32.totalorder %s633_s6, %s452_s27  ;;  %p456_p12 = scmp.lt.u32.totalorder %s452_s27, %s633_s6 }
 0x295   :  { %p458_p13 = pnand %p456_p12, %p453_p11 }
 0x297   :  { %461 = shalt.err (!%p458_p13)
}
 0x298   :  { %256 = dma.vmem_to_hbm [thread:$0]  %s251_s21, 256, %s633_s6, [#allocation4], %s474_s9, %s474_s9, %s475_s10  }
 0x299   :  { %470 = dma.done.wait [#allocation4], 256  }
 0x29a   :  { %471 = vsyncadd [#allocation4], 4294967040 }
 0x29b   :  { %260 = vsyncpa [#allocation3], 1 }
 0x29c   :  { %261 = vsyncpa [#allocation6], 1 }
 0x29d   :  { %262 = vsyncpa [#allocation9], 1 }
 0x29e   :  { %263 = vsyncpa [#allocation12], 1 }
 0x29f   :  { %264 = vsyncpa [#allocation4], 1 }

// kernel: qil_bert_attention.3
= control target key start
LH: loop header
LB: loop body
LE: loop exit
PB: predicated region body
PF: predicated region fallthrough
CT: control target
= control target key end

     0   :  { %8 = vsyncpa [#allocation3], 0  ;;  %s388_s0 = inlined_call_operand.hbm [shape: f32[16,32], index: 0, kind: input, shape index: {}]   ;;  %s389_s1 = inlined_call_operand.hbm [shape: f32[32,96], index: 1, kind: input, shape index: {}]   ;;  %s390_s2 = inlined_call_operand.hbm [shape: f32[1,96], index: 2, kind: input, shape index: {}]   ;;  %s391_s3 = inlined_call_operand.hbm [shape: f32[16,96], index: 3, kind: output, shape index: {}]  }
   0x1   :  { %9 = vsyncpa [#allocation6], 0 }
   0x2   :  { %10 = vsyncpa [#allocation4], 0  ;;  %s298_s12 = smov [#allocation5]   ;;  %s299_s14 = smov [#allocation2]  }
   0x3   :  { %s28_s13 = sshll.u32 %s298_s12, 4  ;;  %s16_s15 = sshll.u32 %s299_s14, 4  ;;  %s29_s13 = int_to_ptr.vmem [resolvable:$true] %s28_s13  ;;  %s324_s15 = int_to_ptr.vmem [resolvable:$true] %s16_s15 }
   0x4   :  { %s204_s18 = scalar_lea.hbm %s389_s1, 512 }
   0x5   :  { %p205_p0 = scmp.ne.s32.totalorder %s389_s1, %s204_s18  ;;  %p208_p1 = scmp.lt.u32.totalorder %s204_s18, %s389_s1 }
   0x7   :  { %p210_p2 = pnand %p208_p1, %p205_p0 }
   0x9   :  { %213 = shalt.err (!%p210_p2)
}
   0xa   :  { %s214_s23 = scalar_lea.vmem %s29_s13, 512  ;;  %p219_p4 = scmp.lt.s32.totalorder %s29_s13, %s29_s13 }
   0xb   :  { %p215_p3 = scmp.ne.s32.totalorder %s29_s13, %s214_s23  ;;  %p220_p5 = scmp.lt.s32.totalorder %s214_s23, %s214_s23 }
   0xd   :  { %p221_p6 = por %p220_p5, %p219_p4 }
   0xf   :  { %p222_p7 = pnand %p221_p6, %p215_p3 }
  0x11   :  { %225 = shalt.err (!%p222_p7)
}
  0x12   :  { %s300_s24 = smov 128   ;;  %s301_s25 = smov 8  }
  0x13   :  { %34 = dma.hbm_to_vmem [thread:$0]  %s389_s1, 512, %s29_s13, [#allocation6], %s300_s24, %s300_s24, %s301_s25  }
  0x14   :  { %s226_s30 = scalar_lea.hbm %s388_s0, 256 }
  0x15   :  { %p227_p8 = scmp.ne.s32.totalorder %s388_s0, %s226_s30  ;;  %p230_p9 = scmp.lt.u32.totalorder %s226_s30, %s388_s0 }
  0x17   :  { %p232_p10 = pnand %p230_p9, %p227_p8 }
  0x19   :  { %235 = shalt.err (!%p232_p10)
}
  0x1a   :  { %s236_s8 = scalar_lea.vmem %s324_s15, 256  ;;  %p241_p12 = scmp.lt.s32.totalorder %s324_s15, %s324_s15 }
  0x1b   :  { %p237_p11 = scmp.ne.s32.totalorder %s324_s15, %s236_s8  ;;  %p242_p13 = scmp.lt.s32.totalorder %s236_s8, %s236_s8 }
  0x1d   :  { %p243_p0 = por %p242_p13, %p241_p12 }
  0x1f   :  { %p244_p1 = pnand %p243_p0, %p237_p11 }
  0x21   :  { %247 = shalt.err (!%p244_p1)
}
  0x22   :  { %22 = dma.hbm_to_vmem [thread:$0]  %s388_s0, 256, %s324_s15, [#allocation3], %s300_s24, %s300_s24, %s301_s25  }
  0x23   :  { %s302_s10 = smov [#allocation7]   ;;  %s248_s14 = scalar_lea.hbm %s390_s2, 16 }
  0x24   :  { %s41_s11 = sshll.u32 %s302_s10, 4  ;;  %p249_p2 = scmp.ne.s32.totalorder %s390_s2, %s248_s14  ;;  %s42_s11 = int_to_ptr.vmem [resolvable:$true] %s41_s11 }
  0x25   :  { %p252_p3 = scmp.lt.u32.totalorder %s248_s14, %s390_s2 }
  0x27   :  { %p254_p4 = pnand %p252_p3, %p249_p2 }
  0x29   :  { %257 = shalt.err (!%p254_p4)
}
  0x2a   :  { %s258_s20 = scalar_lea.vmem %s42_s11, 16  ;;  %s262_s0 = scalar_lea.vmem %s42_s11, 32 }
  0x2b   :  { %p259_p5 = scmp.ne.s32.totalorder %s42_s11, %s258_s20  ;;  %p263_p6 = scmp.lt.s32.totalorder %s42_s11, %s42_s11 }
  0x2c   :  { %p264_p7 = scmp.lt.s32.totalorder %s262_s0, %s258_s20 }
  0x2e   :  { %p265_p8 = por %p264_p7, %p263_p6 }
  0x30   :  { %p266_p9 = pnand %p265_p8, %p259_p5 }
  0x32   :  { %269 = shalt.err (!%p266_p9)
}
  0x33   :  { %44 = dma.hbm_to_vmem [thread:$0]  %s390_s2, 16, %s42_s11, [#allocation6]  }
  0x34   :  { %292 = dma.done.wait [#allocation3], 256  }
  0x35   :  { %293 = vsyncadd [#allocation3], 4294967040 }
  0x36   :  { %294 = dma.done.wait [#allocation6], 528  }
  0x37   :  { %295 = vsyncadd [#allocation6], 4294966768  ;;  %vm67_vm0 = vcmask 261120   ;;  %v56_v0 = vld [vmem:[#allocation5] sm:$0xff]  ;;  %v57_v1 = vld [vmem:[#allocation5 + $0x8] sm:$0xff]  ;;  %s303_s2 = smov [#allocation8]  }
  0x38   :  { %v58_v2 = vld [vmem:[#allocation5 + $0x10] sm:$0xff]  ;;  %v190_v3 = vpack.c.bf16 %v57_v1, %v56_v0  ;;  %v59_v4 = vld [vmem:[#allocation5 + $0x18] sm:$0xff]  ;;  %v170_v8 = vld [vmem:[#allocation7] ss:$0 sm:$0xff]  ;;  %s157_s22 = sshll.u32 %s303_s2, 4  ;;  %vm149_vm1 = vcmask 785408   ;;  %s158_s22 = int_to_ptr.vmem [resolvable:$true] %s157_s22 }
  0x39   :  { %v54_v5 = vld [vmem:[#allocation2] sm:$0xff]  ;;  %v194_v6 = vpack.c.bf16 %v59_v4, %v58_v2  ;;  %v55_v7 = vld [vmem:[#allocation2 + $0x8] sm:$0xff]  ;;  %s270_s23 = scalar_lea.vmem %s158_s22, 256  ;;  %p275_p11 = scmp.lt.s32.totalorder %s158_s22, %s158_s22 }
  0x3a   :  { %187 = vmatprep.mubr.msk.f32.mxu0 %vm67_vm0, %v54_v5  ;;  %191 = vmatprep.subr.bf16.mxu0 %v190_v3  ;;  %p271_p10 = scmp.ne.s32.totalorder %s158_s22, %s270_s23  ;;  %p276_p12 = scmp.lt.s32.totalorder %s270_s23, %s270_s23 }
  0x3b   :  { %193 = vmatpush3.bf16.msra.mxu0 %v190_v3 }
  0x3c   :  { %195 = vmatprep.subr.bf16.mxu0 %v194_v6  ;;  %p277_p13 = por %p276_p12, %p275_p11 }
  0x3e   :  { %p278_p0 = pnand %p277_p13, %p271_p10 }
  0x3f   :  { %197 = vmatpush3.bf16.msra.mxu0 %v194_v6 }
  0x42   :  { %188 = vmatmul.mubr.msk.f32.vlgmr.msra.gmra.mrb[0].mxu0 %vm67_vm0, %v55_v7 }
 0x115   :  { %v189_v9 = vpop.f32.mrb[0].mxu0 }
 0x116   :  { %v146_v10 = vadd.f32 %v189_v9, %v170_v8  ;;  %v140_v11 = vpop.f32.mrb[1].mxu0 }
 0x117   :  { %v141_v12 = vadd.f32 %v170_v8, %v140_v11 }
 0x118   :  { %151 = vst.msk [vmem:[#allocation8 + $0x8] sm:$0xff] %vm149_vm1, %v146_v10 }
 0x119   :  { %150 = vst.msk [vmem:[#allocation8] sm:$0xff] %vm149_vm1, %v141_v12 }
 0x11a   :  { %281 = shalt.err (!%p278_p0)
}
 0x11b   :  { %s282_s28 = scalar_lea.hbm %s391_s3, 256 }
 0x11c   :  { %p283_p1 = scmp.ne.s32.totalorder %s391_s3, %s282_s28  ;;  %p286_p2 = scmp.lt.u32.totalorder %s282_s28, %s391_s3 }
 0x11e   :  { %p288_p3 = pnand %p286_p2, %p283_p1 }
 0x120   :  { %291 = shalt.err (!%p288_p3)
}
 0x121   :  { %163 = dma.vmem_to_hbm [thread:$0]  %s158_s22, 256, %s391_s3, [#allocation4], %s300_s24, %s300_s24, %s301_s25  }
 0x122   :  { %296 = dma.done.wait [#allocation4], 256  }
 0x123   :  { %297 = vsyncadd [#allocation4], 4294967040 }
 0x124   :  { %167 = vsyncpa [#allocation3], 1 }
 0x125   :  { %168 = vsyncpa [#allocation6], 1 }
 0x126   :  { %169 = vsyncpa [#allocation4], 1 }

// kernel: qil_bert_attention.4
= control target key start
LH: loop header
LB: loop body
LE: loop exit
PB: predicated region body
PF: predicated region fallthrough
CT: control target
= control target key end

     0   :  { %7 = vsyncpa [#allocation3], 0  ;;  %s1590_s0 = inlined_call_operand.hbm [shape: f32[2,8,96], index: 0, kind: input, shape index: {}]   ;;  %s1591_s1 = inlined_call_operand.hbm [shape: f32[2,1,8], index: 1, kind: input, shape index: {}]   ;;  %s1592_s2 = inlined_call_operand.hbm [shape: f32[2,8,32], index: 2, kind: output, shape index: {}]  }
   0x1   :  { %9 = vsyncpa [#allocation3 + $0x1], 0 }
   0x2   :  { %10 = vsyncpa [#allocation6], 0 }
   0x3   :  { %12 = vsyncpa [#allocation6 + $0x1], 0 }
   0x4   :  { %13 = vsyncpa [#allocation4], 0 }
   0x5   :  { %15 = vsyncpa [#allocation4 + $0x1], 0  ;;  %s1317_s9 = smov 0   ;;  %s1319_s10 = smov 0  }
   0x6   :  { %s1321_s11 = smov 0   ;;  %s1323_s12 = smov 0  }
   0x7 LB: > { %s1338_s13 = sadd.s32 4294967295, %s1281_s12   ;;  %s986_s14 = sadd.s32 4294967294, %s1281_s12   ;;  %s1281_s12 = sphi %s1323_s12, %s1611_s12   ;;  %s1277_s11 = sphi %s1321_s11, %s1610_s11   ;;  %s1273_s10 = sphi %s1319_s10, %s1609_s10   ;;  %s1269_s9 = sphi %s1317_s9, %s1608_s9  }
   0x8   : > { %s1342_s15 = sadd.s32 1, %s1281_s12   ;;  %s28_s16 = sadd.s32 1, %s1277_s11 }
   0x9   : > { %s25_s17 = ssub.s32 %s1281_s12, %s1342_s15  ;;  %p35_p0 = scmp.ne.s32.totalorder %s1277_s11, %s1273_s10 }
   0xa   : > { %p26_p1 = scmp.eq.s32.totalorder %s25_s17, 0  ;;  %p36_p2 = scmp.eq.s32.totalorder %s1281_s12, 0 }
   0xb   : > { %p41_p3 = scmp.ne.s32.totalorder %s1273_s10, %s1269_s9  ;;  %p42_p4 = scmp.eq.s32.totalorder %s1338_s13, 0 }
   0xc   : > { %s1354_s18 = scalar_select %p26_p1, %s1277_s11, %s28_s16  }
   0xd   : > { %p1356_p5 = por %p36_p2, %p35_p0  ;;  %p1360_p6 = por %p42_p4, %p41_p3 }
   0xe   : > { %p91_p7 = scmp.eq.s32.totalorder %s1338_s13, 1  ;;  %p97_p8 = scmp.eq.s32.totalorder %s986_s14, 1 }
   0xf   : > { %s1596_s20 = scalar_select %p1360_p6, 1, 0 }
  0x10   : > { %p1085_p10 = scmp.lt.s32.totalorder %s1281_s12, 2  ;;  %p1367_p11 = por %p91_p7, %p35_p0 }
  0x11   : > { %p1371_p12 = por %p97_p8, %p41_p3  ;;  %s1376_s23 = sand.u32 1, %s1277_s11  }
  0x12   : > { %s1597_s21 = scalar_select %p1367_p11, 1, 0 }
  0x13   : > { %s1598_s22 = scalar_select %p1371_p12, 1, 0 }
  0x14   : > { %s990_s24 = sshll.u32 %s1281_s12, 7  ;;  %s989_s25 = sshll.u32 %s1376_s23, 3 }
  0x15   : > { %s1383_s28 = scalar_lea.hbm %s1590_s0, %s990_s24  ;;  %s121_s29 = scalar_lea.vmem [#allocation2], %s989_s25 }
  0x16   : > { %s128_s30 = sshll.u32 %s121_s29, 4  ;;  %p1387_p13 = pnand %p1085_p10, %p1356_p5  ;;  %s1391_s30 = int_to_ptr.vmem [resolvable:$true] %s128_s30 }
  0x17   : > { %s118_s4 = scalar_lea.sflag [#allocation3], %s1376_s23  ;;  %s1151_s5 = scalar_lea.hbm %s1383_s28, 128 }
  0x18   : > { %p1152_p2 = scmp.ne.s32.totalorder %s1383_s28, %s1151_s5  ;;  %p1153_p3 = pneg %p1387_p13 }
  0x19   : > { %s1156_s8 = scalar_lea.hbm %s1590_s0, 256  ;;  %p1157_p5 = scmp.lt.u32.totalorder %s1383_s28, %s1590_s0 }
  0x1a   : > { %p1154_p4 = pnand %p1153_p3, %p1152_p2  ;;  %p1158_p8 = scmp.lt.u32.totalorder %s1156_s8, %s1151_s5 }
  0x1b   : > { %p1160_p9 = scmp.lt.u32.totalorder %s1151_s5, %s1383_s28 }
  0x1c   : > { %p1155_p7 = pneg %p1154_p4  ;;  %p1159_p10 = por %p1158_p8, %p1157_p5 }
  0x1e   : > { %p1161_p0 = por %p1160_p9, %p1159_p10 }
  0x20   : > { %p1162_p1 = pnand %p1161_p0, %p1155_p7 }
  0x22   : > { %1165 = shalt.err (!%p1162_p1)
}
  0x23   : > { %s1166_s17 = scalar_lea.vmem %s1391_s30, 128  ;;  %s1283_s19 = smov [#allocation2]  }
  0x24   : > { %p1167_p2 = scmp.ne.s32.totalorder %s1391_s30, %s1166_s17  ;;  %s1171_s24 = sshll.u32 %s1283_s19, 4  ;;  %s1172_s24 = int_to_ptr.vmem [resolvable:$false] %s1171_s24 }
  0x25   : > { %s1173_s25 = scalar_lea.vmem %s1172_s24, 256  ;;  %p1174_p11 = scmp.lt.s32.totalorder %s1391_s30, %s1172_s24 }
  0x26   : > { %p1169_p4 = pnand %p1167_p2, %p1153_p3  ;;  %p1175_p5 = scmp.lt.s32.totalorder %s1173_s25, %s1166_s17 }
  0x28   : > { %p1170_p12 = pneg %p1169_p4  ;;  %p1176_p8 = por %p1175_p5, %p1174_p11 }
  0x2a   : > { %p1177_p9 = pnand %p1176_p8, %p1170_p12 }
  0x2c   : > { %1180 = shalt.err (!%p1177_p9)
}
  0x2d   : > { %1077 = dma.hbm_to_vmem [thread:$0]  (!%p1387_p13), %s1383_s28, 128, %s1391_s30, %s118_s4  }
  0x2e   : > { %p1600_p0 = scmp.lt.s32.totalorder %s1281_s12, 3  ;;  %p1601_p1 = scmp.ge.s32.totalorder %s1281_s12, 1 }
  0x2f   : > { %s991_s27 = sshll.u32 %s1281_s12, 4  ;;  %s138_s7 = scalar_lea.vmem [#allocation5], %s1376_s23 }
  0x30   : > { %p1425_p7 = pnand %p1601_p1, %p1600_p0  ;;  %s1433_s6 = scalar_lea.hbm %s1591_s1, %s991_s27 }
  0x31   : > { %s145_s8 = sshll.u32 %s138_s7, 4  ;;  %s136_s28 = scalar_lea.sflag [#allocation6], %s1376_s23  ;;  %s146_s8 = int_to_ptr.vmem [resolvable:$true] %s145_s8 }
  0x32   : > { %s1602_s26 = scalar_select %p1425_p7, 1, 0 }
  0x33   : > { %s1181_s30 = scalar_lea.hbm %s1433_s6, 16  ;;  %s1186_s16 = scalar_lea.hbm %s1591_s1, 32 }
  0x34   : > { %p1182_p11 = scmp.ne.s32.totalorder %s1433_s6, %s1181_s30  ;;  %p1187_p2 = scmp.lt.u32.totalorder %s1433_s6, %s1591_s1 }
  0x35   : > { %p1188_p4 = scmp.lt.u32.totalorder %s1186_s16, %s1181_s30  ;;  %p1190_p8 = scmp.lt.u32.totalorder %s1181_s30, %s1433_s6 }
  0x36   : > { %p1184_p12 = pnand %p1182_p11, %p1153_p3 }
  0x37   : > { %p1189_p5 = por %p1188_p4, %p1187_p2 }
  0x38   : > { %p1185_p10 = pneg %p1184_p12 }
  0x39   : > { %p1191_p9 = por %p1190_p8, %p1189_p5 }
  0x3b   : > { %p1192_p0 = pnand %p1191_p9, %p1185_p10 }
  0x3d   : > { %1195 = shalt.err (!%p1192_p0)
}
  0x3e   : > { %s1196_s23 = scalar_lea.vmem %s146_s8, 16  ;;  %s1284_s24 = smov [#allocation5]  }
  0x3f   : > { %p1197_p1 = scmp.ne.s32.totalorder %s146_s8, %s1196_s23  ;;  %s1201_s25 = sshll.u32 %s1284_s24, 4  ;;  %s1202_s25 = int_to_ptr.vmem [resolvable:$false] %s1201_s25 }
  0x40   : > { %s1203_s27 = scalar_lea.vmem %s1202_s25, 32  ;;  %p1204_p6 = scmp.lt.s32.totalorder %s146_s8, %s1202_s25 }
  0x41   : > { %p1199_p11 = pnand %p1197_p1, %p1153_p3  ;;  %p1205_p7 = scmp.lt.s32.totalorder %s1203_s27, %s1196_s23 }
  0x43   : > { %p1200_p12 = pneg %p1199_p11  ;;  %p1206_p2 = por %p1205_p7, %p1204_p6 }
  0x45   : > { %p1207_p4 = pnand %p1206_p2, %p1200_p12 }
  0x47   : > { %1210 = shalt.err (!%p1207_p4)
}
  0x48   : > { %1080 = dma.hbm_to_vmem [thread:$0]  (!%p1387_p13), %s1433_s6, 16, %s146_s8, %s136_s28  }
  0x49   : > { %p1603_p10 = scmp.ne.s32.totalorder %s1602_s26, 0 }
  0x4a   : > { %s1459_s29 = sand.u32 (!%p1603_p10), 1, %s1273_s10   ;;  %p1604_p6 = scmp.ne.s32.totalorder (!%p1603_p10), %s1596_s20, 0 }
  0x4b   : > { %154 = sbr.rel (%p1603_p10) target bundleno = 1306 (0x51a), region = 28  ;;  %s993_s5 = sshll.u32 (!%p1603_p10), %s1459_s29, 3 }
  0x4c   : > { %s157_s7 = scalar_lea.sflag (!%p1603_p10), [#allocation3], %s1459_s29  ;;  %s160_s30 = scalar_lea.vmem (!%p1603_p10), [#allocation2], %s993_s5 }
  0x52   : > { %1256 = dma.done.wait (%p1604_p6), %s157_s7, 128  }
  0x53   : > { %1258 = vsyncadd (%p1604_p6), %s157_s7, 4294967168  ;;  %s166_s3 = scalar_lea.sflag [#allocation6], %s1459_s29  ;;  %s168_s26 = scalar_lea.vmem [#allocation5], %s1459_s29 }
  0x54   : > { %1260 = dma.done.wait (%p1604_p6), %s166_s3, 16  }
  0x55   : > { %1262 = vsyncadd (%p1604_p6), %s166_s3, 4294967280  ;;  %v1285_v0 = vmov 0.0   ;;  %vm1286_vm0 = vmmov 0   ;;  %v1481_v1 = vld [vmem:[%s160_s30] sm:$0xff]  ;;  %s1287_s6 = smov 96   ;;  %vm205_vm1 = vcmask 64512  }
  0x56   : > { %1028 = vmatprep.subr.mxu0 %v1285_v0  ;;  %1030 = vmatprep.mubr.msk.f32.mxu0 %vm1286_vm0, %v1285_v0  ;;  %v195_v3 = vmul.f32 0.35355338, %v1481_v1  ;;  %s1288_s20 = smov 64   ;;  %s1289_s8 = smov 88   ;;  %v995_v4 = vld [vmem:[%s168_s26] ss:$0 sm:$0xff] }
  0x57   : > { %1033 = vmatprep.subr.mxu1 %v1285_v0  ;;  %1035 = vmatprep.mubr.msk.f32.mxu1 %vm1286_vm0, %v1285_v0  ;;  %s1290_s28 = smov 120   ;;  %s1291_s4 = smov 80   ;;  %vm876_vm2 = vcmask 130048   ;;  %vm878_vm3 = vcmask 195584   ;;  %vm880_vm4 = vcmask 261120  }
  0x58   : > { %203 = vrot.lane.b32.xlu0 %v1481_v1, %s1287_s6  ;;  %290 = vrot.lane.b32.xlu1 %v1481_v1, %s1288_s20  ;;  %s1292_s14 = smov 112   ;;  %s1293_s16 = smov 72  }
  0x59   : > { %s1294_s17 = smov 104   ;;  %s1295_s19 = smov 56  }
  0x5a   : > { %s1296_s23 = smov 48   ;;  %s1297_s24 = smov 40  }
  0x5b   : > { %s1298_s25 = smov 8   ;;  %s1299_s27 = smov 16  }
  0x5c   : > { %370 = vrot.lane.b32.xlu1 %v1481_v1, %s1289_s8  ;;  %s1300_s7 = smov 24   ;;  %s1009_s30 = sshll.u32 %s1338_s13, 7 }
  0x5d   : > { %s192_s3 = scalar_lea.vmem [#allocation7], %s993_s5  ;;  %s1546_s8 = scalar_lea.hbm %s1592_s2, %s1009_s30 }
  0x5e   : > { %s896_s26 = sshll.u32 %s192_s3, 4  ;;  %s883_s13 = scalar_lea.sflag [#allocation4], %s1459_s29  ;;  %s1548_s26 = int_to_ptr.vmem [resolvable:$true] %s896_s26 }
  0x5f   : > { %s1211_s5 = scalar_lea.vmem %s1548_s26, 128  ;;  %p1605_p3 = scmp.ne.s32.totalorder %s1597_s21, 0 }
  0x60   : > { %368 = vrot.lane.b32.xlu1 %v195_v3, %s1290_s28  ;;  %p1212_p13 = scmp.ne.s32.totalorder %s1548_s26, %s1211_s5  ;;  %s1301_s28 = smov [#allocation7]  }
  0x62   : > { %p1213_p7 = pnand %p1212_p13, %p1605_p3 }
  0x64   : > { %535 = vrot.lane.b32.xlu1 %v1481_v1, %s1291_s4  ;;  %p1214_p5 = pneg %p1213_p7  ;;  %s1215_s4 = sshll.u32 %s1301_s28, 4  ;;  %s1216_s4 = int_to_ptr.vmem [resolvable:$false] %s1215_s4 }
  0x65   : > { %p1218_p8 = scmp.lt.s32.totalorder %s1548_s26, %s1216_s4 }
  0x68   : > { %533 = vrot.lane.b32.xlu1 %v195_v3, %s1292_s14  ;;  %s1217_s14 = scalar_lea.vmem %s1216_s4, 256 }
  0x69   : > { %p1219_p9 = scmp.lt.s32.totalorder %s1217_s14, %s1211_s5 }
  0x6b   : > { %p1220_p0 = por %p1219_p9, %p1218_p8 }
  0x6c   : > { %700 = vrot.lane.b32.xlu1 %v1481_v1, %s1293_s16 }
  0x6d   : > { %p1221_p1 = pnand %p1220_p0, %p1214_p5 }
  0x70   : > { %698 = vrot.lane.b32.xlu1 %v195_v3, %s1294_s17 }
  0xca   : > { %v204_v2 = vpop.permute.xlu0 %203  ;;  %v291_v9 = vpop.permute.xlu1 %290 }
  0xcb   : > { %1029 = vmatpush3.xpose.msk.msra.mxu0 %vm205_vm1, %v204_v2  ;;  %1034 = vmatpush3.msra.mxu1 %v291_v9 }
  0xcc   : > { %1043 = vmatprep.subr.mxu0 %v1285_v0  ;;  %1038 = vmatprep.subr.mxu1 %v1285_v0 }
  0xce   : > { %1031 = vmatmul.mubr.msk.f32.vlgmr.msra.gmra.mrb[0].mxu0 %vm205_vm1, %v195_v3  ;;  %v371_v10 = vpop.permute.xlu1 %370 }
  0xcf   : > { %1045 = vmatprep.mubr.msk.f32.mxu0 %vm1286_vm0, %v1285_v0 }
  0xd2   : > { %v369_v13 = vpop.permute.xlu1 %368 }
  0xd6   : > { %v536_v15 = vpop.permute.xlu1 %535 }
  0xda   : > { %v534_v16 = vpop.permute.xlu1 %533 }
  0xde   : > { %v701_v18 = vpop.permute.xlu1 %700 }
  0xe2   : > { %v699_v19 = vpop.permute.xlu1 %698 }
 0x1a1   : > { %v277_v5 = vpop.f32.mrb[0].mxu0 }
 0x1a2   : > { %v278_v6 = vadd.f32 %v995_v4, %v277_v5  ;;  %v1032_v7 = vpop.f32.mrb[1].mxu0 }
 0x1a4   : > { %v281_v8 = vsel %vm205_vm1, %v278_v6, -inf }
 0x1a5   : > { %282 = vmax.xlane.f32.xlu0 %v281_v8 }
 0x1bb   : > { %455 = vrot.lane.b32.xlu0 %v1481_v1, %s1295_s19 }
 0x232   : > { %v283_v11 = vpop.xlane.xlu0 %282 }
 0x233   : > { %v284_v12 = vsub.f32 %v278_v6, %v283_v11 }
 0x235   : > { %v285_v14 = vmul.f32 1.442695, %v284_v12 }
 0x236   : > { %v456_v20 = vpop.permute.xlu0 %455 }
 0x237   : > { %1135 = vpow2.f32 %v285_v14  ;;  %1044 = vmatpush3.msra.mxu0 %v456_v20 }
 0x238   : > { %1053 = vmatprep.subr.mxu0 %v1285_v0 }
 0x241   : > { %v1499_v17 = vpop.eup %1135 }
 0x242   : > { %1036 = vmatmul.mubr.msk.f32.vlgmr.msra.gmra.mrb[0].mxu1 %vm205_vm1, %v1499_v17  ;;  %v287_v52 = vsel %vm205_vm1, %v1499_v17, 0.0 }
 0x243   : > { %1039 = vmatpush3.xpose.msk.msra.mxu1 %vm205_vm1, %v371_v10  ;;  %1040 = vmatprep.mubr.msk.f32.mxu1 %vm1286_vm0, %v1285_v0 }
 0x244   : > { %1048 = vmatprep.subr.mxu1 %v1285_v0 }
 0x246   : > { %1041 = vmatmul.mubr.msk.f32.vlgmr.msra.gmra.mrb[2].mxu1 %vm205_vm1, %v369_v13 }
 0x247   : > { %1049 = vmatpush3.xpose.msk.msra.mxu1 %vm205_vm1, %v536_v15  ;;  %1050 = vmatprep.mubr.msk.f32.mxu1 %vm1286_vm0, %v1285_v0 }
 0x248   : > { %1058 = vmatprep.subr.mxu1 %v1285_v0 }
 0x24a   : > { %1051 = vmatmul.mubr.msk.f32.vlgmr.msra.gmra.mrb[4].mxu1 %vm205_vm1, %v534_v16 }
 0x24b   : > { %1059 = vmatpush3.xpose.msk.msra.mxu1 %vm205_vm1, %v701_v18  ;;  %1060 = vmatprep.mubr.msk.f32.mxu1 %vm1286_vm0, %v1285_v0 }
 0x24e   : > { %1061 = vmatmul.mubr.msk.f32.vlgmr.msra.gmra.mrb[6].mxu1 %vm205_vm1, %v699_v19 }
 0x315   : > { %v1518_v21 = vpop.f32.mrb[0].mxu1 }
 0x316   : > { %v1037_v22 = vpop.f32.mrb[1].mxu1 }
 0x319   : > { %v442_v23 = vpop.f32.mrb[2].mxu1 }
 0x31a   : > { %v443_v24 = vadd.f32 %v995_v4, %v442_v23  ;;  %v1042_v25 = vpop.f32.mrb[3].mxu1 }
 0x31c   : > { %v446_v26 = vsel %vm205_vm1, %v443_v24, -inf }
 0x31d   : > { %447 = vmax.xlane.f32.xlu1 %v446_v26  ;;  %v607_v27 = vpop.f32.mrb[4].mxu1 }
 0x31e   : > { %v608_v28 = vadd.f32 %v995_v4, %v607_v27  ;;  %v1052_v29 = vpop.f32.mrb[5].mxu1 }
 0x320   : > { %v611_v30 = vsel %vm205_vm1, %v608_v28, -inf }
 0x321   : > { %612 = vmax.xlane.f32.xlu0 %v611_v30  ;;  %v772_v31 = vpop.f32.mrb[6].mxu1 }
 0x322   : > { %v773_v32 = vadd.f32 %v995_v4, %v772_v31  ;;  %v1062_v33 = vpop.f32.mrb[7].mxu1 }
 0x324   : > { %v776_v34 = vsel %vm205_vm1, %v773_v32, -inf }
 0x325   : > { %777 = vmax.xlane.f32.xlu0 %v776_v34 }
 0x32e   : > { %620 = vrot.lane.b32.xlu1 %v1481_v1, %s1296_s23 }
 0x33b   : > { %785 = vrot.lane.b32.xlu0 %v1481_v1, %s1297_s24 }
 0x3aa   : > { %v448_v35 = vpop.xlane.xlu1 %447 }
 0x3ab   : > { %v449_v36 = vsub.f32 %v443_v24, %v448_v35 }
 0x3ad   : > { %v450_v37 = vmul.f32 1.442695, %v449_v36 }
 0x3ae   : > { %v613_v38 = vpop.xlane.xlu0 %612  ;;  %v621_v44 = vpop.permute.xlu1 %620 }
 0x3af   : > { %1137 = vpow2.f32 %v450_v37  ;;  %v614_v39 = vsub.f32 %v608_v28, %v613_v38 }
 0x3b1   : > { %v615_v40 = vmul.f32 1.442695, %v614_v39 }
 0x3b2   : > { %v778_v41 = vpop.xlane.xlu0 %777 }
 0x3b3   : > { %1139 = vpow2.f32 %v615_v40  ;;  %v779_v42 = vsub.f32 %v773_v32, %v778_v41 }
 0x3b5   : > { %v780_v43 = vmul.f32 1.442695, %v779_v42 }
 0x3b6   : > { %v786_v47 = vpop.permute.xlu0 %785 }
 0x3b7   : > { %1141 = vpow2.f32 %v780_v43 }
 0x3b9   : > { %v1138_v45 = vpop.eup %1137 }
 0x3ba   : > { %1046 = vmatmul.mubr.msk.f32.vlgmr.msra.gmra.mrb[2].mxu0 %vm205_vm1, %v1138_v45  ;;  %v452_v46 = vsel %vm205_vm1, %v1138_v45, 0.0 }
 0x3bb   : > { %1054 = vmatpush3.msra.mxu0 %v621_v44  ;;  %453 = vadd.xlane.f32.xlu0 %v452_v46 }
 0x3bc   : > { %1055 = vmatprep.mubr.msk.f32.mxu0 %vm1286_vm0, %v1285_v0  ;;  %1063 = vmatprep.subr.mxu0 %v1285_v0 }
 0x3bd   : > { %v1140_v48 = vpop.eup %1139 }
 0x3be   : > { %1056 = vmatmul.mubr.msk.f32.vlgmr.msra.gmra.mrb[4].mxu0 %vm205_vm1, %v1140_v48  ;;  %v617_v49 = vsel %vm205_vm1, %v1140_v48, 0.0 }
 0x3bf   : > { %1064 = vmatpush3.msra.mxu0 %v786_v47  ;;  %618 = vadd.xlane.f32.xlu1 %v617_v49 }
 0x3c0   : > { %1065 = vmatprep.mubr.msk.f32.mxu0 %vm1286_vm0, %v1285_v0 }
 0x3c1   : > { %v1142_v50 = vpop.eup %1141 }
 0x3c2   : > { %1066 = vmatmul.mubr.msk.f32.vlgmr.msra.gmra.mrb[6].mxu0 %vm205_vm1, %v1142_v50  ;;  %v782_v51 = vsel %vm205_vm1, %v1142_v50, 0.0 }
 0x3c3   : > { %783 = vadd.xlane.f32.xlu0 %v782_v51 }
 0x3c7   : > { %288 = vadd.xlane.f32.xlu0 %v287_v52 }
 0x448   : > { %v454_v53 = vpop.xlane.xlu0 %453 }
 0x449   : > { %1143 = vrcp.f32 %v454_v53 }
 0x44c   : > { %v619_v54 = vpop.xlane.xlu1 %618 }
 0x44d   : > { %1145 = vrcp.f32 %v619_v54 }
 0x450   : > { %v784_v55 = vpop.xlane.xlu0 %783 }
 0x451   : > { %1147 = vrcp.f32 %v784_v55 }
 0x453   : > { %v1144_v56 = vpop.eup %1143 }
 0x454   : > { %v289_v4 = vpop.xlane.xlu0 %288 }
 0x455   : > { %1149 = vrcp.f32 %v289_v4 }
 0x457   : > { %v1146_v60 = vpop.eup %1145 }
 0x45b   : > { %v1148_v0 = vpop.eup %1147 }
 0x45f   : > { %v1150_v5 = vpop.eup %1149 }
 0x460   : > { %v367_v7 = vmul.f32 %v1150_v5, %v1518_v21 }
 0x48d   : > { %v527_v57 = vpop.f32.mrb[2].mxu0 }
 0x48e   : > { %v532_v58 = vmul.f32 %v1144_v56, %v527_v57  ;;  %v1047_v59 = vpop.f32.mrb[3].mxu0 }
 0x490   : > { %864 = vrot.lane.b32.xlu0 %v532_v58, %s1298_s25 }
 0x491   : > { %v692_v61 = vpop.f32.mrb[4].mxu0 }
 0x492   : > { %v697_v62 = vmul.f32 %v1146_v60, %v692_v61  ;;  %v1057_v63 = vpop.f32.mrb[5].mxu0 }
 0x494   : > { %868 = vrot.lane.b32.xlu1 %v697_v62, %s1299_s27 }
 0x495   : > { %v857_v1 = vpop.f32.mrb[6].mxu0 }
 0x496   : > { %v862_v2 = vmul.f32 %v1148_v0, %v857_v1  ;;  %v1067_v3 = vpop.f32.mrb[7].mxu0 }
 0x498   : > { %872 = vrot.lane.b32.xlu0 %v862_v2, %s1300_s7 }
 0x502   : > { %v865_v6 = vpop.permute.xlu0 %864 }
 0x503   : > { %v875_v9 = vsel %vm205_vm1, %v367_v7, %v865_v6 }
 0x506   : > { %v869_v8 = vpop.permute.xlu1 %868 }
 0x507   : > { %v877_v10 = vsel %vm876_vm2, %v875_v9, %v869_v8 }
 0x50a   : > { %v873_v11 = vpop.permute.xlu0 %872 }
 0x50b   : > { %v879_v12 = vsel %vm878_vm3, %v877_v10, %v873_v11 }
 0x50c   : > { %881 = vst.msk [vmem:[%s192_s3] sm:$0xff] %vm880_vm4, %v879_v12 }
 0x50d   : > { %1224 = shalt.err (!%p1221_p1)
}
 0x50e   : > { %s1225_s29 = scalar_lea.hbm %s1546_s8, 128  ;;  %s1229_s19 = scalar_lea.hbm %s1592_s2, 256 }
 0x50f   : > { %p1226_p11 = scmp.ne.s32.totalorder %s1546_s8, %s1225_s29  ;;  %p1230_p4 = scmp.lt.u32.totalorder %s1546_s8, %s1592_s2 }
 0x510   : > { %p1231_p10 = scmp.lt.u32.totalorder %s1229_s19, %s1225_s29  ;;  %p1233_p13 = scmp.lt.u32.totalorder %s1225_s29, %s1546_s8 }
 0x511   : > { %p1227_p12 = pnand %p1226_p11, %p1605_p3 }
 0x512   : > { %p1232_p6 = por %p1231_p10, %p1230_p4 }
 0x513   : > { %p1228_p2 = pneg %p1227_p12 }
 0x514   : > { %p1234_p7 = por %p1233_p13, %p1232_p6 }
 0x516   : > { %p1235_p5 = pnand %p1234_p7, %p1228_p2 }
 0x518   : > { %1238 = shalt.err (!%p1235_p5)
}
 0x519   : > { %1072 = dma.vmem_to_hbm [thread:$0]  (%p1605_p3), %s1548_s26, 128, %s1546_s8, %s883_s13  }
 0x51a PF: > { %s908_s25 = sand.u32 1, %s1269_s9   ;;  %p1606_p8 = scmp.ne.s32.totalorder %s1598_s22, 0 }
 0x51b   : > { %p1607_p9 = scmp.ge.s32.totalorder %s1281_s12, 2  ;;  %s909_s27 = scalar_lea.sflag [#allocation4], %s908_s25 }
 0x51d   : > { %p1082_p0 = pnand %p1607_p9, %p1606_p8 }
 0x51f   : > { %1264 = dma.done.wait (!%p1082_p0), %s909_s27, 128  }
 0x520   : > { %1266 = vsyncadd (!%p1082_p0), %s909_s27, 4294967168  ;;  %p18_p1 = scmp.ge.s32.totalorder %s1342_s15, 4   ;;  %s1608_s9 = smov %s1273_s10 }
 0x521   : > { %s1609_s10 = smov %s1277_s11  ;;  %s1610_s11 = smov %s1354_s18 }
 0x522   : > { %s1611_s12 = smov %s1342_s15  ;;  %20 = sbr.rel (!%p18_p1) target bundleno = 7 (0x7), region = 86 }
 0x529   :  { %914 = vsyncpa [#allocation3], 1 }
 0x52a   :  { %916 = vsyncpa [#allocation3 + $0x1], 1 }
 0x52b   :  { %917 = vsyncpa [#allocation6], 1 }
 0x52c   :  { %919 = vsyncpa [#allocation6 + $0x1], 1 }
 0x52d   :  { %920 = vsyncpa [#allocation4], 1 }
 0x52e   :  { %922 = vsyncpa [#allocation4 + $0x1], 1 }

</bundles_post_ra>
